<compile_context>
chip_gen: v7x
topology: tpu7x:2x2x1
jax: 0.10.0
libtpu: 0.0.40
codegen_flags: <defaults>
</compile_context>

<pallas_src>
import functools

import jax
import jax.numpy as jnp
from jax.experimental import pallas as pl
from jax.experimental.pallas import tpu as pltpu


def _cross_attention_kernel(tgt_ref, src_ref, wq_ref, wk_ref, wv_ref, wo_ref,
                            bo_ref, out_ref, *, heads, scale):
    """Fused cross-attention forward.

    tgt:  (B, F_tgt)  f32      query-side input  (x[1])
    src:  (B, F_src)  f32      key/value-side input (x[0])
    wq:   (heads, F_tgt, dh)   bf16   to_q.weight.T  split per head
    wk:   (heads, F_src, dh)   bf16   first half of to_kv.weight.T per head
    wv:   (heads, F_src, dh)   bf16   second half of to_kv.weight.T per head
    wo:   (heads, dh, F_out)   bf16   to_out[0].weight.T split per head
    bo:   (1, F_out)  f32      to_out[0].bias
    out:  (B, F_out)  f32
    """
    tgt = tgt_ref[...].astype(jnp.bfloat16)          # (B, F_tgt)
    src = src_ref[...].astype(jnp.bfloat16)          # (B, F_src)

    acc = jnp.zeros(out_ref.shape, jnp.float32)      # (B, F_out)
    for h in range(heads):                           # static unroll (heads=8)
        q = jnp.dot(tgt, wq_ref[h], preferred_element_type=jnp.float32)  # (B, dh)
        k = jnp.dot(src, wk_ref[h], preferred_element_type=jnp.float32)  # (B, dh)
        v = jnp.dot(src, wv_ref[h], preferred_element_type=jnp.float32)  # (B, dh)

        # einsum('b i, b i -> b i') is an elementwise product per head.
        dots = q * k * scale
        m = jnp.max(dots, axis=-1, keepdims=True)
        e = jnp.exp(dots - m)
        attn = e / jnp.sum(e, axis=-1, keepdims=True)
        # nn.Dropout(p=0.0) -> identity (omitted).

        # Per-head slice of to_out projection, accumulated in f32.
        acc = acc + jnp.dot((attn * v).astype(jnp.bfloat16), wo_ref[h],
                            preferred_element_type=jnp.float32)          # (B, F_out)

    out_ref[...] = acc + bo_ref[...]


def cross_attention_forward(src, tgt, wq, wkv, wo, bo, *, heads, dim_head):
    """src = x[0]: (B, F_src);  tgt = x[1]: (B, F_tgt).

    wq : (F_tgt, inner)    == to_q.weight.T
    wkv: (F_src, 2*inner)  == to_kv.weight.T
    wo : (inner, F_out)    == to_out[0].weight.T
    bo : (F_out,)          == to_out[0].bias
    """
    B, F_tgt = tgt.shape
    _, F_src = src.shape
    inner = heads * dim_head
    F_out = wo.shape[1]

    # Pre-split weights per head and cast to bf16 (DMA win; f32 accumulation
    # inside the kernel).  'b (h d)' packing => head h owns columns
    # [h*dh, (h+1)*dh) of the inner dimension.
    wq_h = wq.reshape(F_tgt, heads, dim_head).transpose(1, 0, 2).astype(jnp.bfloat16)
    wk_h = wkv[:, :inner].reshape(F_src, heads, dim_head).transpose(1, 0, 2).astype(jnp.bfloat16)
    wv_h = wkv[:, inner:].reshape(F_src, heads, dim_head).transpose(1, 0, 2).astype(jnp.bfloat16)
    wo_h = wo.reshape(heads, dim_head, F_out).astype(jnp.bfloat16)
    bo2d = bo[None, :].astype(jnp.float32)

    kernel = functools.partial(_cross_attention_kernel, heads=heads,
                               scale=float(dim_head) ** -0.5)
    vmem = pl.BlockSpec(memory_space=pltpu.MemorySpace.VMEM)

    # Single-shot call: no grid, no pipelining — total VMEM footprint < 1 MB.
    return pl.pallas_call(
        kernel,
        out_shape=jax.ShapeDtypeStruct((B, F_out), jnp.float32),
        in_specs=[vmem] * 7,
        out_specs=vmem,
    )(tgt, src, wq_h, wk_h, wv_h, wo_h, bo2d)


if __name__ == "__main__":
    # Module config: shape = {'branch_a': (B, F), 'branch_b': (B, F)} (the two
    # feature dims must match for the module's own __init__ probe to run),
    # heads=8, dim_head=64, dropout=0.0 -> inner_dim = 512.
    B, F = 2, 32
    HEADS, DIM_HEAD = 8, 64
    INNER = HEADS * DIM_HEAD

    key = jax.random.PRNGKey(0)
    ks, kt, kq, kkv, kw, kb = jax.random.split(key, 6)

    src = jax.random.normal(ks, (B, F), dtype=jnp.float32)   # x[0]
    tgt = jax.random.normal(kt, (B, F), dtype=jnp.float32)   # x[1]

    wq = jax.random.normal(kq, (F, INNER), dtype=jnp.float32) / jnp.sqrt(F)
    wkv = jax.random.normal(kkv, (F, 2 * INNER), dtype=jnp.float32) / jnp.sqrt(F)
    wo = jax.random.normal(kw, (INNER, F), dtype=jnp.float32) / jnp.sqrt(INNER)
    bo = jax.random.normal(kb, (F,), dtype=jnp.float32) * 0.01

    fwd = jax.jit(functools.partial(cross_attention_forward,
                                    heads=HEADS, dim_head=DIM_HEAD))
    out = fwd(src, tgt, wq, wkv, wo, bo)
    jax.block_until_ready(out)

    assert out.shape == (B, F), out.shape
    assert out.dtype == jnp.float32
    assert bool(jnp.all(jnp.isfinite(out)))
    print("KERNEL_OK")
</pallas_src>

<mosaic_0001>
module attributes {stable_mosaic.version = 11 : i64} {
  func.func @_cross_attention_kernel(%arg0: memref<2x32xf32, #tpu.memory_space<vmem>>, %arg1: memref<2x32xf32, #tpu.memory_space<vmem>>, %arg2: memref<8x32x64xbf16, #tpu.memory_space<vmem>>, %arg3: memref<8x32x64xbf16, #tpu.memory_space<vmem>>, %arg4: memref<8x32x64xbf16, #tpu.memory_space<vmem>>, %arg5: memref<8x64x32xbf16, #tpu.memory_space<vmem>>, %arg6: memref<1x32xf32, #tpu.memory_space<vmem>>, %arg7: memref<2x32xf32, #tpu.memory_space<vmem>>) attributes {dimension_semantics = [], scalar_prefetch = 0 : i64, scratch_operands = 0 : i64, tpu.core_type = #tpu.core_type<tc>} {
    %c0 = arith.constant 0 : index
    %c0_0 = arith.constant 0 : index
    %0 = vector.load %arg0[%c0, %c0_0] : memref<2x32xf32, #tpu.memory_space<vmem>>, vector<2x32xf32>
    %1 = arith.truncf %0 : vector<2x32xf32> to vector<2x32xbf16>
    %c0_1 = arith.constant 0 : index
    %c0_2 = arith.constant 0 : index
    %2 = vector.load %arg1[%c0_1, %c0_2] : memref<2x32xf32, #tpu.memory_space<vmem>>, vector<2x32xf32>
    %3 = arith.truncf %2 : vector<2x32xf32> to vector<2x32xbf16>
    %cst = arith.constant 0.000000e+00 : f32
    %4 = vector.broadcast %cst : f32 to vector<2x32xf32>
    %c0_3 = arith.constant 0 : index
    %c0_4 = arith.constant 0 : index
    %c0_5 = arith.constant 0 : index
    %5 = vector.load %arg2[%c0_3, %c0_4, %c0_5] : memref<8x32x64xbf16, #tpu.memory_space<vmem>>, vector<1x32x64xbf16>
    %6 = vector.shape_cast %5 : vector<1x32x64xbf16> to vector<32x64xbf16>
    %cst_6 = arith.constant dense<0.000000e+00> : vector<2x64xf32>
    %7 = tpu.matmul %1, %6, %cst_6 {dimension_numbers = #tpu.dot_dimension_numbers<[1], [0], [0], [1], [0, 0, 1, 1], [], []>} : vector<2x32xbf16>, vector<32x64xbf16>, vector<2x64xf32> -> vector<2x64xf32>
    %c0_7 = arith.constant 0 : index
    %c0_8 = arith.constant 0 : index
    %c0_9 = arith.constant 0 : index
    %8 = vector.load %arg3[%c0_7, %c0_8, %c0_9] : memref<8x32x64xbf16, #tpu.memory_space<vmem>>, vector<1x32x64xbf16>
    %9 = vector.shape_cast %8 : vector<1x32x64xbf16> to vector<32x64xbf16>
    %cst_10 = arith.constant dense<0.000000e+00> : vector<2x64xf32>
    %10 = tpu.matmul %3, %9, %cst_10 {dimension_numbers = #tpu.dot_dimension_numbers<[1], [0], [0], [1], [0, 0, 1, 1], [], []>} : vector<2x32xbf16>, vector<32x64xbf16>, vector<2x64xf32> -> vector<2x64xf32>
    %c0_11 = arith.constant 0 : index
    %c0_12 = arith.constant 0 : index
    %c0_13 = arith.constant 0 : index
    %11 = vector.load %arg4[%c0_11, %c0_12, %c0_13] : memref<8x32x64xbf16, #tpu.memory_space<vmem>>, vector<1x32x64xbf16>
    %12 = vector.shape_cast %11 : vector<1x32x64xbf16> to vector<32x64xbf16>
    %cst_14 = arith.constant dense<0.000000e+00> : vector<2x64xf32>
    %13 = tpu.matmul %3, %12, %cst_14 {dimension_numbers = #tpu.dot_dimension_numbers<[1], [0], [0], [1], [0, 0, 1, 1], [], []>} : vector<2x32xbf16>, vector<32x64xbf16>, vector<2x64xf32> -> vector<2x64xf32>
    %14 = arith.mulf %7, %10 : vector<2x64xf32>
    %cst_15 = arith.constant 1.250000e-01 : f32
    %15 = vector.broadcast %cst_15 : f32 to vector<2x64xf32>
    %16 = arith.mulf %14, %15 : vector<2x64xf32>
    %cst_16 = arith.constant dense<0xFF800000> : vector<2xf32>
    %17 = vector.multi_reduction <maximumf>, %16, %cst_16 [1] : vector<2x64xf32> to vector<2xf32>
    %18 = vector.shape_cast %17 : vector<2xf32> to vector<2x1xf32>
    %19 = vector.broadcast %18 : vector<2x1xf32> to vector<2x64xf32>
    %20 = arith.subf %16, %19 : vector<2x64xf32>
    %21 = math.exp %20 : vector<2x64xf32>
    %cst_17 = arith.constant dense<0.000000e+00> : vector<2xf32>
    %22 = vector.multi_reduction <add>, %21, %cst_17 [1] : vector<2x64xf32> to vector<2xf32>
    %23 = vector.shape_cast %22 : vector<2xf32> to vector<2x1xf32>
    %24 = vector.broadcast %23 : vector<2x1xf32> to vector<2x64xf32>
    %25 = arith.divf %21, %24 : vector<2x64xf32>
    %26 = arith.mulf %25, %13 : vector<2x64xf32>
    %27 = arith.truncf %26 : vector<2x64xf32> to vector<2x64xbf16>
    %c0_18 = arith.constant 0 : index
    %c0_19 = arith.constant 0 : index
    %c0_20 = arith.constant 0 : index
    %28 = vector.load %arg5[%c0_18, %c0_19, %c0_20] : memref<8x64x32xbf16, #tpu.memory_space<vmem>>, vector<1x64x32xbf16>
    %29 = vector.shape_cast %28 : vector<1x64x32xbf16> to vector<64x32xbf16>
    %cst_21 = arith.constant dense<0.000000e+00> : vector<2x32xf32>
    %30 = tpu.matmul %27, %29, %cst_21 {dimension_numbers = #tpu.dot_dimension_numbers<[1], [0], [0], [1], [0, 0, 1, 1], [], []>} : vector<2x64xbf16>, vector<64x32xbf16>, vector<2x32xf32> -> vector<2x32xf32>
    %31 = arith.addf %4, %30 : vector<2x32xf32>
    %c1 = arith.constant 1 : index
    %c0_22 = arith.constant 0 : index
    %c0_23 = arith.constant 0 : index
    %32 = vector.load %arg2[%c1, %c0_22, %c0_23] : memref<8x32x64xbf16, #tpu.memory_space<vmem>>, vector<1x32x64xbf16>
    %33 = vector.shape_cast %32 : vector<1x32x64xbf16> to vector<32x64xbf16>
    %cst_24 = arith.constant dense<0.000000e+00> : vector<2x64xf32>
    %34 = tpu.matmul %1, %33, %cst_24 {dimension_numbers = #tpu.dot_dimension_numbers<[1], [0], [0], [1], [0, 0, 1, 1], [], []>} : vector<2x32xbf16>, vector<32x64xbf16>, vector<2x64xf32> -> vector<2x64xf32>
    %c1_25 = arith.constant 1 : index
    %c0_26 = arith.constant 0 : index
    %c0_27 = arith.constant 0 : index
    %35 = vector.load %arg3[%c1_25, %c0_26, %c0_27] : memref<8x32x64xbf16, #tpu.memory_space<vmem>>, vector<1x32x64xbf16>
    %36 = vector.shape_cast %35 : vector<1x32x64xbf16> to vector<32x64xbf16>
    %cst_28 = arith.constant dense<0.000000e+00> : vector<2x64xf32>
    %37 = tpu.matmul %3, %36, %cst_28 {dimension_numbers = #tpu.dot_dimension_numbers<[1], [0], [0], [1], [0, 0, 1, 1], [], []>} : vector<2x32xbf16>, vector<32x64xbf16>, vector<2x64xf32> -> vector<2x64xf32>
    %c1_29 = arith.constant 1 : index
    %c0_30 = arith.constant 0 : index
    %c0_31 = arith.constant 0 : index
    %38 = vector.load %arg4[%c1_29, %c0_30, %c0_31] : memref<8x32x64xbf16, #tpu.memory_space<vmem>>, vector<1x32x64xbf16>
    %39 = vector.shape_cast %38 : vector<1x32x64xbf16> to vector<32x64xbf16>
    %cst_32 = arith.constant dense<0.000000e+00> : vector<2x64xf32>
    %40 = tpu.matmul %3, %39, %cst_32 {dimension_numbers = #tpu.dot_dimension_numbers<[1], [0], [0], [1], [0, 0, 1, 1], [], []>} : vector<2x32xbf16>, vector<32x64xbf16>, vector<2x64xf32> -> vector<2x64xf32>
    %41 = arith.mulf %34, %37 : vector<2x64xf32>
    %cst_33 = arith.constant 1.250000e-01 : f32
    %42 = vector.broadcast %cst_33 : f32 to vector<2x64xf32>
    %43 = arith.mulf %41, %42 : vector<2x64xf32>
    %cst_34 = arith.constant dense<0xFF800000> : vector<2xf32>
    %44 = vector.multi_reduction <maximumf>, %43, %cst_34 [1] : vector<2x64xf32> to vector<2xf32>
    %45 = vector.shape_cast %44 : vector<2xf32> to vector<2x1xf32>
    %46 = vector.broadcast %45 : vector<2x1xf32> to vector<2x64xf32>
    %47 = arith.subf %43, %46 : vector<2x64xf32>
    %48 = math.exp %47 : vector<2x64xf32>
    %cst_35 = arith.constant dense<0.000000e+00> : vector<2xf32>
    %49 = vector.multi_reduction <add>, %48, %cst_35 [1] : vector<2x64xf32> to vector<2xf32>
    %50 = vector.shape_cast %49 : vector<2xf32> to vector<2x1xf32>
    %51 = vector.broadcast %50 : vector<2x1xf32> to vector<2x64xf32>
    %52 = arith.divf %48, %51 : vector<2x64xf32>
    %53 = arith.mulf %52, %40 : vector<2x64xf32>
    %54 = arith.truncf %53 : vector<2x64xf32> to vector<2x64xbf16>
    %c1_36 = arith.constant 1 : index
    %c0_37 = arith.constant 0 : index
    %c0_38 = arith.constant 0 : index
    %55 = vector.load %arg5[%c1_36, %c0_37, %c0_38] : memref<8x64x32xbf16, #tpu.memory_space<vmem>>, vector<1x64x32xbf16>
    %56 = vector.shape_cast %55 : vector<1x64x32xbf16> to vector<64x32xbf16>
    %cst_39 = arith.constant dense<0.000000e+00> : vector<2x32xf32>
    %57 = tpu.matmul %54, %56, %cst_39 {dimension_numbers = #tpu.dot_dimension_numbers<[1], [0], [0], [1], [0, 0, 1, 1], [], []>} : vector<2x64xbf16>, vector<64x32xbf16>, vector<2x32xf32> -> vector<2x32xf32>
    %58 = arith.addf %31, %57 : vector<2x32xf32>
    %c2 = arith.constant 2 : index
    %c0_40 = arith.constant 0 : index
    %c0_41 = arith.constant 0 : index
    %59 = vector.load %arg2[%c2, %c0_40, %c0_41] : memref<8x32x64xbf16, #tpu.memory_space<vmem>>, vector<1x32x64xbf16>
    %60 = vector.shape_cast %59 : vector<1x32x64xbf16> to vector<32x64xbf16>
    %cst_42 = arith.constant dense<0.000000e+00> : vector<2x64xf32>
    %61 = tpu.matmul %1, %60, %cst_42 {dimension_numbers = #tpu.dot_dimension_numbers<[1], [0], [0], [1], [0, 0, 1, 1], [], []>} : vector<2x32xbf16>, vector<32x64xbf16>, vector<2x64xf32> -> vector<2x64xf32>
    %c2_43 = arith.constant 2 : index
    %c0_44 = arith.constant 0 : index
    %c0_45 = arith.constant 0 : index
    %62 = vector.load %arg3[%c2_43, %c0_44, %c0_45] : memref<8x32x64xbf16, #tpu.memory_space<vmem>>, vector<1x32x64xbf16>
    %63 = vector.shape_cast %62 : vector<1x32x64xbf16> to vector<32x64xbf16>
    %cst_46 = arith.constant dense<0.000000e+00> : vector<2x64xf32>
    %64 = tpu.matmul %3, %63, %cst_46 {dimension_numbers = #tpu.dot_dimension_numbers<[1], [0], [0], [1], [0, 0, 1, 1], [], []>} : vector<2x32xbf16>, vector<32x64xbf16>, vector<2x64xf32> -> vector<2x64xf32>
    %c2_47 = arith.constant 2 : index
    %c0_48 = arith.constant 0 : index
    %c0_49 = arith.constant 0 : index
    %65 = vector.load %arg4[%c2_47, %c0_48, %c0_49] : memref<8x32x64xbf16, #tpu.memory_space<vmem>>, vector<1x32x64xbf16>
    %66 = vector.shape_cast %65 : vector<1x32x64xbf16> to vector<32x64xbf16>
    %cst_50 = arith.constant dense<0.000000e+00> : vector<2x64xf32>
    %67 = tpu.matmul %3, %66, %cst_50 {dimension_numbers = #tpu.dot_dimension_numbers<[1], [0], [0], [1], [0, 0, 1, 1], [], []>} : vector<2x32xbf16>, vector<32x64xbf16>, vector<2x64xf32> -> vector<2x64xf32>
    %68 = arith.mulf %61, %64 : vector<2x64xf32>
    %cst_51 = arith.constant 1.250000e-01 : f32
    %69 = vector.broadcast %cst_51 : f32 to vector<2x64xf32>
    %70 = arith.mulf %68, %69 : vector<2x64xf32>
    %cst_52 = arith.constant dense<0xFF800000> : vector<2xf32>
    %71 = vector.multi_reduction <maximumf>, %70, %cst_52 [1] : vector<2x64xf32> to vector<2xf32>
    %72 = vector.shape_cast %71 : vector<2xf32> to vector<2x1xf32>
    %73 = vector.broadcast %72 : vector<2x1xf32> to vector<2x64xf32>
    %74 = arith.subf %70, %73 : vector<2x64xf32>
    %75 = math.exp %74 : vector<2x64xf32>
    %cst_53 = arith.constant dense<0.000000e+00> : vector<2xf32>
    %76 = vector.multi_reduction <add>, %75, %cst_53 [1] : vector<2x64xf32> to vector<2xf32>
    %77 = vector.shape_cast %76 : vector<2xf32> to vector<2x1xf32>
    %78 = vector.broadcast %77 : vector<2x1xf32> to vector<2x64xf32>
    %79 = arith.divf %75, %78 : vector<2x64xf32>
    %80 = arith.mulf %79, %67 : vector<2x64xf32>
    %81 = arith.truncf %80 : vector<2x64xf32> to vector<2x64xbf16>
    %c2_54 = arith.constant 2 : index
    %c0_55 = arith.constant 0 : index
    %c0_56 = arith.constant 0 : index
    %82 = vector.load %arg5[%c2_54, %c0_55, %c0_56] : memref<8x64x32xbf16, #tpu.memory_space<vmem>>, vector<1x64x32xbf16>
    %83 = vector.shape_cast %82 : vector<1x64x32xbf16> to vector<64x32xbf16>
    %cst_57 = arith.constant dense<0.000000e+00> : vector<2x32xf32>
    %84 = tpu.matmul %81, %83, %cst_57 {dimension_numbers = #tpu.dot_dimension_numbers<[1], [0], [0], [1], [0, 0, 1, 1], [], []>} : vector<2x64xbf16>, vector<64x32xbf16>, vector<2x32xf32> -> vector<2x32xf32>
    %85 = arith.addf %58, %84 : vector<2x32xf32>
    %c3 = arith.constant 3 : index
    %c0_58 = arith.constant 0 : index
    %c0_59 = arith.constant 0 : index
    %86 = vector.load %arg2[%c3, %c0_58, %c0_59] : memref<8x32x64xbf16, #tpu.memory_space<vmem>>, vector<1x32x64xbf16>
    %87 = vector.shape_cast %86 : vector<1x32x64xbf16> to vector<32x64xbf16>
    %cst_60 = arith.constant dense<0.000000e+00> : vector<2x64xf32>
    %88 = tpu.matmul %1, %87, %cst_60 {dimension_numbers = #tpu.dot_dimension_numbers<[1], [0], [0], [1], [0, 0, 1, 1], [], []>} : vector<2x32xbf16>, vector<32x64xbf16>, vector<2x64xf32> -> vector<2x64xf32>
    %c3_61 = arith.constant 3 : index
    %c0_62 = arith.constant 0 : index
    %c0_63 = arith.constant 0 : index
    %89 = vector.load %arg3[%c3_61, %c0_62, %c0_63] : memref<8x32x64xbf16, #tpu.memory_space<vmem>>, vector<1x32x64xbf16>
    %90 = vector.shape_cast %89 : vector<1x32x64xbf16> to vector<32x64xbf16>
    %cst_64 = arith.constant dense<0.000000e+00> : vector<2x64xf32>
    %91 = tpu.matmul %3, %90, %cst_64 {dimension_numbers = #tpu.dot_dimension_numbers<[1], [0], [0], [1], [0, 0, 1, 1], [], []>} : vector<2x32xbf16>, vector<32x64xbf16>, vector<2x64xf32> -> vector<2x64xf32>
    %c3_65 = arith.constant 3 : index
    %c0_66 = arith.constant 0 : index
    %c0_67 = arith.constant 0 : index
    %92 = vector.load %arg4[%c3_65, %c0_66, %c0_67] : memref<8x32x64xbf16, #tpu.memory_space<vmem>>, vector<1x32x64xbf16>
    %93 = vector.shape_cast %92 : vector<1x32x64xbf16> to vector<32x64xbf16>
    %cst_68 = arith.constant dense<0.000000e+00> : vector<2x64xf32>
    %94 = tpu.matmul %3, %93, %cst_68 {dimension_numbers = #tpu.dot_dimension_numbers<[1], [0], [0], [1], [0, 0, 1, 1], [], []>} : vector<2x32xbf16>, vector<32x64xbf16>, vector<2x64xf32> -> vector<2x64xf32>
    %95 = arith.mulf %88, %91 : vector<2x64xf32>
    %cst_69 = arith.constant 1.250000e-01 : f32
    %96 = vector.broadcast %cst_69 : f32 to vector<2x64xf32>
    %97 = arith.mulf %95, %96 : vector<2x64xf32>
    %cst_70 = arith.constant dense<0xFF800000> : vector<2xf32>
    %98 = vector.multi_reduction <maximumf>, %97, %cst_70 [1] : vector<2x64xf32> to vector<2xf32>
    %99 = vector.shape_cast %98 : vector<2xf32> to vector<2x1xf32>
    %100 = vector.broadcast %99 : vector<2x1xf32> to vector<2x64xf32>
    %101 = arith.subf %97, %100 : vector<2x64xf32>
    %102 = math.exp %101 : vector<2x64xf32>
    %cst_71 = arith.constant dense<0.000000e+00> : vector<2xf32>
    %103 = vector.multi_reduction <add>, %102, %cst_71 [1] : vector<2x64xf32> to vector<2xf32>
    %104 = vector.shape_cast %103 : vector<2xf32> to vector<2x1xf32>
    %105 = vector.broadcast %104 : vector<2x1xf32> to vector<2x64xf32>
    %106 = arith.divf %102, %105 : vector<2x64xf32>
    %107 = arith.mulf %106, %94 : vector<2x64xf32>
    %108 = arith.truncf %107 : vector<2x64xf32> to vector<2x64xbf16>
    %c3_72 = arith.constant 3 : index
    %c0_73 = arith.constant 0 : index
    %c0_74 = arith.constant 0 : index
    %109 = vector.load %arg5[%c3_72, %c0_73, %c0_74] : memref<8x64x32xbf16, #tpu.memory_space<vmem>>, vector<1x64x32xbf16>
    %110 = vector.shape_cast %109 : vector<1x64x32xbf16> to vector<64x32xbf16>
    %cst_75 = arith.constant dense<0.000000e+00> : vector<2x32xf32>
    %111 = tpu.matmul %108, %110, %cst_75 {dimension_numbers = #tpu.dot_dimension_numbers<[1], [0], [0], [1], [0, 0, 1, 1], [], []>} : vector<2x64xbf16>, vector<64x32xbf16>, vector<2x32xf32> -> vector<2x32xf32>
    %112 = arith.addf %85, %111 : vector<2x32xf32>
    %c4 = arith.constant 4 : index
    %c0_76 = arith.constant 0 : index
    %c0_77 = arith.constant 0 : index
    %113 = vector.load %arg2[%c4, %c0_76, %c0_77] : memref<8x32x64xbf16, #tpu.memory_space<vmem>>, vector<1x32x64xbf16>
    %114 = vector.shape_cast %113 : vector<1x32x64xbf16> to vector<32x64xbf16>
    %cst_78 = arith.constant dense<0.000000e+00> : vector<2x64xf32>
    %115 = tpu.matmul %1, %114, %cst_78 {dimension_numbers = #tpu.dot_dimension_numbers<[1], [0], [0], [1], [0, 0, 1, 1], [], []>} : vector<2x32xbf16>, vector<32x64xbf16>, vector<2x64xf32> -> vector<2x64xf32>
    %c4_79 = arith.constant 4 : index
    %c0_80 = arith.constant 0 : index
    %c0_81 = arith.constant 0 : index
    %116 = vector.load %arg3[%c4_79, %c0_80, %c0_81] : memref<8x32x64xbf16, #tpu.memory_space<vmem>>, vector<1x32x64xbf16>
    %117 = vector.shape_cast %116 : vector<1x32x64xbf16> to vector<32x64xbf16>
    %cst_82 = arith.constant dense<0.000000e+00> : vector<2x64xf32>
    %118 = tpu.matmul %3, %117, %cst_82 {dimension_numbers = #tpu.dot_dimension_numbers<[1], [0], [0], [1], [0, 0, 1, 1], [], []>} : vector<2x32xbf16>, vector<32x64xbf16>, vector<2x64xf32> -> vector<2x64xf32>
    %c4_83 = arith.constant 4 : index
    %c0_84 = arith.constant 0 : index
    %c0_85 = arith.constant 0 : index
    %119 = vector.load %arg4[%c4_83, %c0_84, %c0_85] : memref<8x32x64xbf16, #tpu.memory_space<vmem>>, vector<1x32x64xbf16>
    %120 = vector.shape_cast %119 : vector<1x32x64xbf16> to vector<32x64xbf16>
    %cst_86 = arith.constant dense<0.000000e+00> : vector<2x64xf32>
    %121 = tpu.matmul %3, %120, %cst_86 {dimension_numbers = #tpu.dot_dimension_numbers<[1], [0], [0], [1], [0, 0, 1, 1], [], []>} : vector<2x32xbf16>, vector<32x64xbf16>, vector<2x64xf32> -> vector<2x64xf32>
    %122 = arith.mulf %115, %118 : vector<2x64xf32>
    %cst_87 = arith.constant 1.250000e-01 : f32
    %123 = vector.broadcast %cst_87 : f32 to vector<2x64xf32>
    %124 = arith.mulf %122, %123 : vector<2x64xf32>
    %cst_88 = arith.constant dense<0xFF800000> : vector<2xf32>
    %125 = vector.multi_reduction <maximumf>, %124, %cst_88 [1] : vector<2x64xf32> to vector<2xf32>
    %126 = vector.shape_cast %125 : vector<2xf32> to vector<2x1xf32>
    %127 = vector.broadcast %126 : vector<2x1xf32> to vector<2x64xf32>
    %128 = arith.subf %124, %127 : vector<2x64xf32>
    %129 = math.exp %128 : vector<2x64xf32>
    %cst_89 = arith.constant dense<0.000000e+00> : vector<2xf32>
    %130 = vector.multi_reduction <add>, %129, %cst_89 [1] : vector<2x64xf32> to vector<2xf32>
    %131 = vector.shape_cast %130 : vector<2xf32> to vector<2x1xf32>
    %132 = vector.broadcast %131 : vector<2x1xf32> to vector<2x64xf32>
    %133 = arith.divf %129, %132 : vector<2x64xf32>
    %134 = arith.mulf %133, %121 : vector<2x64xf32>
    %135 = arith.truncf %134 : vector<2x64xf32> to vector<2x64xbf16>
    %c4_90 = arith.constant 4 : index
    %c0_91 = arith.constant 0 : index
    %c0_92 = arith.constant 0 : index
    %136 = vector.load %arg5[%c4_90, %c0_91, %c0_92] : memref<8x64x32xbf16, #tpu.memory_space<vmem>>, vector<1x64x32xbf16>
    %137 = vector.shape_cast %136 : vector<1x64x32xbf16> to vector<64x32xbf16>
    %cst_93 = arith.constant dense<0.000000e+00> : vector<2x32xf32>
    %138 = tpu.matmul %135, %137, %cst_93 {dimension_numbers = #tpu.dot_dimension_numbers<[1], [0], [0], [1], [0, 0, 1, 1], [], []>} : vector<2x64xbf16>, vector<64x32xbf16>, vector<2x32xf32> -> vector<2x32xf32>
    %139 = arith.addf %112, %138 : vector<2x32xf32>
    %c5 = arith.constant 5 : index
    %c0_94 = arith.constant 0 : index
    %c0_95 = arith.constant 0 : index
    %140 = vector.load %arg2[%c5, %c0_94, %c0_95] : memref<8x32x64xbf16, #tpu.memory_space<vmem>>, vector<1x32x64xbf16>
    %141 = vector.shape_cast %140 : vector<1x32x64xbf16> to vector<32x64xbf16>
    %cst_96 = arith.constant dense<0.000000e+00> : vector<2x64xf32>
    %142 = tpu.matmul %1, %141, %cst_96 {dimension_numbers = #tpu.dot_dimension_numbers<[1], [0], [0], [1], [0, 0, 1, 1], [], []>} : vector<2x32xbf16>, vector<32x64xbf16>, vector<2x64xf32> -> vector<2x64xf32>
    %c5_97 = arith.constant 5 : index
    %c0_98 = arith.constant 0 : index
    %c0_99 = arith.constant 0 : index
    %143 = vector.load %arg3[%c5_97, %c0_98, %c0_99] : memref<8x32x64xbf16, #tpu.memory_space<vmem>>, vector<1x32x64xbf16>
    %144 = vector.shape_cast %143 : vector<1x32x64xbf16> to vector<32x64xbf16>
    %cst_100 = arith.constant dense<0.000000e+00> : vector<2x64xf32>
    %145 = tpu.matmul %3, %144, %cst_100 {dimension_numbers = #tpu.dot_dimension_numbers<[1], [0], [0], [1], [0, 0, 1, 1], [], []>} : vector<2x32xbf16>, vector<32x64xbf16>, vector<2x64xf32> -> vector<2x64xf32>
    %c5_101 = arith.constant 5 : index
    %c0_102 = arith.constant 0 : index
    %c0_103 = arith.constant 0 : index
    %146 = vector.load %arg4[%c5_101, %c0_102, %c0_103] : memref<8x32x64xbf16, #tpu.memory_space<vmem>>, vector<1x32x64xbf16>
    %147 = vector.shape_cast %146 : vector<1x32x64xbf16> to vector<32x64xbf16>
    %cst_104 = arith.constant dense<0.000000e+00> : vector<2x64xf32>
    %148 = tpu.matmul %3, %147, %cst_104 {dimension_numbers = #tpu.dot_dimension_numbers<[1], [0], [0], [1], [0, 0, 1, 1], [], []>} : vector<2x32xbf16>, vector<32x64xbf16>, vector<2x64xf32> -> vector<2x64xf32>
    %149 = arith.mulf %142, %145 : vector<2x64xf32>
    %cst_105 = arith.constant 1.250000e-01 : f32
    %150 = vector.broadcast %cst_105 : f32 to vector<2x64xf32>
    %151 = arith.mulf %149, %150 : vector<2x64xf32>
    %cst_106 = arith.constant dense<0xFF800000> : vector<2xf32>
    %152 = vector.multi_reduction <maximumf>, %151, %cst_106 [1] : vector<2x64xf32> to vector<2xf32>
    %153 = vector.shape_cast %152 : vector<2xf32> to vector<2x1xf32>
    %154 = vector.broadcast %153 : vector<2x1xf32> to vector<2x64xf32>
    %155 = arith.subf %151, %154 : vector<2x64xf32>
    %156 = math.exp %155 : vector<2x64xf32>
    %cst_107 = arith.constant dense<0.000000e+00> : vector<2xf32>
    %157 = vector.multi_reduction <add>, %156, %cst_107 [1] : vector<2x64xf32> to vector<2xf32>
    %158 = vector.shape_cast %157 : vector<2xf32> to vector<2x1xf32>
    %159 = vector.broadcast %158 : vector<2x1xf32> to vector<2x64xf32>
    %160 = arith.divf %156, %159 : vector<2x64xf32>
    %161 = arith.mulf %160, %148 : vector<2x64xf32>
    %162 = arith.truncf %161 : vector<2x64xf32> to vector<2x64xbf16>
    %c5_108 = arith.constant 5 : index
    %c0_109 = arith.constant 0 : index
    %c0_110 = arith.constant 0 : index
    %163 = vector.load %arg5[%c5_108, %c0_109, %c0_110] : memref<8x64x32xbf16, #tpu.memory_space<vmem>>, vector<1x64x32xbf16>
    %164 = vector.shape_cast %163 : vector<1x64x32xbf16> to vector<64x32xbf16>
    %cst_111 = arith.constant dense<0.000000e+00> : vector<2x32xf32>
    %165 = tpu.matmul %162, %164, %cst_111 {dimension_numbers = #tpu.dot_dimension_numbers<[1], [0], [0], [1], [0, 0, 1, 1], [], []>} : vector<2x64xbf16>, vector<64x32xbf16>, vector<2x32xf32> -> vector<2x32xf32>
    %166 = arith.addf %139, %165 : vector<2x32xf32>
    %c6 = arith.constant 6 : index
    %c0_112 = arith.constant 0 : index
    %c0_113 = arith.constant 0 : index
    %167 = vector.load %arg2[%c6, %c0_112, %c0_113] : memref<8x32x64xbf16, #tpu.memory_space<vmem>>, vector<1x32x64xbf16>
    %168 = vector.shape_cast %167 : vector<1x32x64xbf16> to vector<32x64xbf16>
    %cst_114 = arith.constant dense<0.000000e+00> : vector<2x64xf32>
    %169 = tpu.matmul %1, %168, %cst_114 {dimension_numbers = #tpu.dot_dimension_numbers<[1], [0], [0], [1], [0, 0, 1, 1], [], []>} : vector<2x32xbf16>, vector<32x64xbf16>, vector<2x64xf32> -> vector<2x64xf32>
    %c6_115 = arith.constant 6 : index
    %c0_116 = arith.constant 0 : index
    %c0_117 = arith.constant 0 : index
    %170 = vector.load %arg3[%c6_115, %c0_116, %c0_117] : memref<8x32x64xbf16, #tpu.memory_space<vmem>>, vector<1x32x64xbf16>
    %171 = vector.shape_cast %170 : vector<1x32x64xbf16> to vector<32x64xbf16>
    %cst_118 = arith.constant dense<0.000000e+00> : vector<2x64xf32>
    %172 = tpu.matmul %3, %171, %cst_118 {dimension_numbers = #tpu.dot_dimension_numbers<[1], [0], [0], [1], [0, 0, 1, 1], [], []>} : vector<2x32xbf16>, vector<32x64xbf16>, vector<2x64xf32> -> vector<2x64xf32>
    %c6_119 = arith.constant 6 : index
    %c0_120 = arith.constant 0 : index
    %c0_121 = arith.constant 0 : index
    %173 = vector.load %arg4[%c6_119, %c0_120, %c0_121] : memref<8x32x64xbf16, #tpu.memory_space<vmem>>, vector<1x32x64xbf16>
    %174 = vector.shape_cast %173 : vector<1x32x64xbf16> to vector<32x64xbf16>
    %cst_122 = arith.constant dense<0.000000e+00> : vector<2x64xf32>
    %175 = tpu.matmul %3, %174, %cst_122 {dimension_numbers = #tpu.dot_dimension_numbers<[1], [0], [0], [1], [0, 0, 1, 1], [], []>} : vector<2x32xbf16>, vector<32x64xbf16>, vector<2x64xf32> -> vector<2x64xf32>
    %176 = arith.mulf %169, %172 : vector<2x64xf32>
    %cst_123 = arith.constant 1.250000e-01 : f32
    %177 = vector.broadcast %cst_123 : f32 to vector<2x64xf32>
    %178 = arith.mulf %176, %177 : vector<2x64xf32>
    %cst_124 = arith.constant dense<0xFF800000> : vector<2xf32>
    %179 = vector.multi_reduction <maximumf>, %178, %cst_124 [1] : vector<2x64xf32> to vector<2xf32>
    %180 = vector.shape_cast %179 : vector<2xf32> to vector<2x1xf32>
    %181 = vector.broadcast %180 : vector<2x1xf32> to vector<2x64xf32>
    %182 = arith.subf %178, %181 : vector<2x64xf32>
    %183 = math.exp %182 : vector<2x64xf32>
    %cst_125 = arith.constant dense<0.000000e+00> : vector<2xf32>
    %184 = vector.multi_reduction <add>, %183, %cst_125 [1] : vector<2x64xf32> to vector<2xf32>
    %185 = vector.shape_cast %184 : vector<2xf32> to vector<2x1xf32>
    %186 = vector.broadcast %185 : vector<2x1xf32> to vector<2x64xf32>
    %187 = arith.divf %183, %186 : vector<2x64xf32>
    %188 = arith.mulf %187, %175 : vector<2x64xf32>
    %189 = arith.truncf %188 : vector<2x64xf32> to vector<2x64xbf16>
    %c6_126 = arith.constant 6 : index
    %c0_127 = arith.constant 0 : index
    %c0_128 = arith.constant 0 : index
    %190 = vector.load %arg5[%c6_126, %c0_127, %c0_128] : memref<8x64x32xbf16, #tpu.memory_space<vmem>>, vector<1x64x32xbf16>
    %191 = vector.shape_cast %190 : vector<1x64x32xbf16> to vector<64x32xbf16>
    %cst_129 = arith.constant dense<0.000000e+00> : vector<2x32xf32>
    %192 = tpu.matmul %189, %191, %cst_129 {dimension_numbers = #tpu.dot_dimension_numbers<[1], [0], [0], [1], [0, 0, 1, 1], [], []>} : vector<2x64xbf16>, vector<64x32xbf16>, vector<2x32xf32> -> vector<2x32xf32>
    %193 = arith.addf %166, %192 : vector<2x32xf32>
    %c7 = arith.constant 7 : index
    %c0_130 = arith.constant 0 : index
    %c0_131 = arith.constant 0 : index
    %194 = vector.load %arg2[%c7, %c0_130, %c0_131] : memref<8x32x64xbf16, #tpu.memory_space<vmem>>, vector<1x32x64xbf16>
    %195 = vector.shape_cast %194 : vector<1x32x64xbf16> to vector<32x64xbf16>
    %cst_132 = arith.constant dense<0.000000e+00> : vector<2x64xf32>
    %196 = tpu.matmul %1, %195, %cst_132 {dimension_numbers = #tpu.dot_dimension_numbers<[1], [0], [0], [1], [0, 0, 1, 1], [], []>} : vector<2x32xbf16>, vector<32x64xbf16>, vector<2x64xf32> -> vector<2x64xf32>
    %c7_133 = arith.constant 7 : index
    %c0_134 = arith.constant 0 : index
    %c0_135 = arith.constant 0 : index
    %197 = vector.load %arg3[%c7_133, %c0_134, %c0_135] : memref<8x32x64xbf16, #tpu.memory_space<vmem>>, vector<1x32x64xbf16>
    %198 = vector.shape_cast %197 : vector<1x32x64xbf16> to vector<32x64xbf16>
    %cst_136 = arith.constant dense<0.000000e+00> : vector<2x64xf32>
    %199 = tpu.matmul %3, %198, %cst_136 {dimension_numbers = #tpu.dot_dimension_numbers<[1], [0], [0], [1], [0, 0, 1, 1], [], []>} : vector<2x32xbf16>, vector<32x64xbf16>, vector<2x64xf32> -> vector<2x64xf32>
    %c7_137 = arith.constant 7 : index
    %c0_138 = arith.constant 0 : index
    %c0_139 = arith.constant 0 : index
    %200 = vector.load %arg4[%c7_137, %c0_138, %c0_139] : memref<8x32x64xbf16, #tpu.memory_space<vmem>>, vector<1x32x64xbf16>
    %201 = vector.shape_cast %200 : vector<1x32x64xbf16> to vector<32x64xbf16>
    %cst_140 = arith.constant dense<0.000000e+00> : vector<2x64xf32>
    %202 = tpu.matmul %3, %201, %cst_140 {dimension_numbers = #tpu.dot_dimension_numbers<[1], [0], [0], [1], [0, 0, 1, 1], [], []>} : vector<2x32xbf16>, vector<32x64xbf16>, vector<2x64xf32> -> vector<2x64xf32>
    %203 = arith.mulf %196, %199 : vector<2x64xf32>
    %cst_141 = arith.constant 1.250000e-01 : f32
    %204 = vector.broadcast %cst_141 : f32 to vector<2x64xf32>
    %205 = arith.mulf %203, %204 : vector<2x64xf32>
    %cst_142 = arith.constant dense<0xFF800000> : vector<2xf32>
    %206 = vector.multi_reduction <maximumf>, %205, %cst_142 [1] : vector<2x64xf32> to vector<2xf32>
    %207 = vector.shape_cast %206 : vector<2xf32> to vector<2x1xf32>
    %208 = vector.broadcast %207 : vector<2x1xf32> to vector<2x64xf32>
    %209 = arith.subf %205, %208 : vector<2x64xf32>
    %210 = math.exp %209 : vector<2x64xf32>
    %cst_143 = arith.constant dense<0.000000e+00> : vector<2xf32>
    %211 = vector.multi_reduction <add>, %210, %cst_143 [1] : vector<2x64xf32> to vector<2xf32>
    %212 = vector.shape_cast %211 : vector<2xf32> to vector<2x1xf32>
    %213 = vector.broadcast %212 : vector<2x1xf32> to vector<2x64xf32>
    %214 = arith.divf %210, %213 : vector<2x64xf32>
    %215 = arith.mulf %214, %202 : vector<2x64xf32>
    %216 = arith.truncf %215 : vector<2x64xf32> to vector<2x64xbf16>
    %c7_144 = arith.constant 7 : index
    %c0_145 = arith.constant 0 : index
    %c0_146 = arith.constant 0 : index
    %217 = vector.load %arg5[%c7_144, %c0_145, %c0_146] : memref<8x64x32xbf16, #tpu.memory_space<vmem>>, vector<1x64x32xbf16>
    %218 = vector.shape_cast %217 : vector<1x64x32xbf16> to vector<64x32xbf16>
    %cst_147 = arith.constant dense<0.000000e+00> : vector<2x32xf32>
    %219 = tpu.matmul %216, %218, %cst_147 {dimension_numbers = #tpu.dot_dimension_numbers<[1], [0], [0], [1], [0, 0, 1, 1], [], []>} : vector<2x64xbf16>, vector<64x32xbf16>, vector<2x32xf32> -> vector<2x32xf32>
    %220 = arith.addf %193, %219 : vector<2x32xf32>
    %c0_148 = arith.constant 0 : index
    %c0_149 = arith.constant 0 : index
    %221 = vector.load %arg6[%c0_148, %c0_149] : memref<1x32xf32, #tpu.memory_space<vmem>>, vector<1x32xf32>
    %222 = vector.broadcast %221 : vector<1x32xf32> to vector<2x32xf32>
    %223 = arith.addf %220, %222 : vector<2x32xf32>
    %c0_150 = arith.constant 0 : index
    %c0_151 = arith.constant 0 : index
    %224 = vector.load %arg7[%c0_150, %c0_151] : memref<2x32xf32, #tpu.memory_space<vmem>>, vector<2x32xf32>
    tpu.vector_store %arg7[%c0_150, %c0_151], %223 {strides = array<i32>} : memref<2x32xf32, #tpu.memory_space<vmem>>, vector<2x32xf32>,
    return
  }
}

</mosaic_0001>

<bundles_post_ra>
// kernel: cross_attention_forward.1
= control target key start
LH: loop header
LB: loop body
LE: loop exit
PB: predicated region body
PF: predicated region fallthrough
CT: control target
= control target key end

     0   :  { %v2955_v1 = vmov 0.0   ;;  %vm2956_vm0 = vmmov 0   ;;  %vm48_vm1 = vcmask 261120   ;;  %s3494_s0 = inlined_call_operand.vmem [shape: f32[2,32], index: 0, kind: input, shape index: {}]   ;;  %s3495_s1 = inlined_call_operand.vmem [shape: f32[2,32], index: 1, kind: input, shape index: {}]   ;;  %s3496_s2 = inlined_call_operand.vmem [shape: bf16[8,32,64], index: 2, kind: input, shape index: {}]   ;;  %s3497_s3 = inlined_call_operand.vmem [shape: bf16[8,32,64], index: 3, kind: input, shape index: {}]   ;;  %s3498_s4 = inlined_call_operand.vmem [shape: bf16[8,32,64], index: 4, kind: input, shape index: {}]   ;;  %s3499_s5 = inlined_call_operand.vmem [shape: bf16[8,64,32], index: 5, kind: input, shape index: {}]   ;;  %s3500_s6 = inlined_call_operand.vmem [shape: f32[1,32], index: 6, kind: input, shape index: {}]   ;;  %s3501_s7 = inlined_call_operand.hbm [shape: f32[2,32], index: 7, kind: output, shape index: {}]  }
   0x1   :  { %v2819_v0 = vld [vmem:[%s3496_s2] sm:$0xff]   ;;  %2528 = vmatprep.subr.bf16.mxu1 %v2955_v1  ;;  %v2820_v2 = vld [vmem:[%s3496_s2 + $0x8] sm:$0xff]   ;;  %2544 = vmatprep.subr.bf16.mxu0 %v2955_v1  ;;  %v2825_v10 = vld [vmem:[%s3497_s3 + $0x10] sm:$0xff]  }
   0x2   :  { %2529 = vmatpush3.bf16.msra.mxu1 %v2819_v0  ;;  %2532 = vmatprep.mubr.msk.bf16.mxu1 %vm2956_vm0, %v2955_v1  ;;  %v2821_v3 = vld [vmem:[%s3498_s4] sm:$0xff]   ;;  %v2823_v6 = vld [vmem:[%s3498_s4 + $0x8] sm:$0xff]   ;;  %v2827_v12 = vld [vmem:[%s3497_s3 + $0x18] sm:$0xff]  }
   0x3   :  { %2530 = vmatprep.subr.bf16.mxu1 %v2955_v1  ;;  %v28_v4 = vld [vmem:[%s3494_s0] sm:$0x3]  ;;  %2548 = vmatprep.mubr.msk.bf16.mxu0 %vm2956_vm0, %v2955_v1  ;;  %v2824_v11 = vld [vmem:[%s3497_s3 + $0x8] sm:$0xff]   ;;  %v2826_v13 = vld [vmem:[%s3496_s2 + $0x10] sm:$0xff]  }
   0x4   :  { %2545 = vmatpush3.bf16.msra.mxu0 %v2821_v3  ;;  %v3017_v5 = vpack.c.bf16 %v28_v4, %v28_v4  ;;  %v2822_v7 = vld [vmem:[%s3497_s3] sm:$0xff]   ;;  %v2828_v14 = vld [vmem:[%s3496_s2 + $0x18] sm:$0xff]  }
   0x5   :  { %2546 = vmatprep.subr.bf16.mxu0 %v2955_v1  ;;  %v30_v8 = vld [vmem:[%s3495_s1] sm:$0x3] }
   0x6   :  { %2531 = vmatpush3.bf16.msra.mxu1 %v2820_v2  ;;  %v3030_v9 = vpack.c.bf16 %v30_v8, %v30_v8 }
   0x7   :  { %2536 = vmatprep.subr.bf16.mxu1 %v2955_v1 }
   0x8   :  { %2547 = vmatpush3.bf16.msra.mxu0 %v2823_v6 }
   0x9   :  { %2533 = vmatmul.mubr.msk.bf16.vlgmr.msra.gmra.mrb[0].mxu1 %vm48_vm1, %v3017_v5  ;;  %2560 = vmatprep.subr.bf16.mxu0 %v2955_v1 }
   0xa   :  { %2537 = vmatpush3.bf16.msra.mxu1 %v2822_v7  ;;  %2540 = vmatprep.mubr.msk.bf16.mxu1 %vm2956_vm0, %v2955_v1 }
   0xb   :  { %2538 = vmatprep.subr.bf16.mxu1 %v2955_v1  ;;  %2549 = vmatmul.mubr.msk.bf16.vlgmr.msra.gmra.mrb[0].mxu0 %vm48_vm1, %v3030_v9 }
   0xc   :  { %2561 = vmatpush3.bf16.msra.mxu0 %v2825_v10  ;;  %2564 = vmatprep.mubr.msk.bf16.mxu0 %vm2956_vm0, %v2955_v1 }
   0xd   :  { %2562 = vmatprep.subr.bf16.mxu0 %v2955_v1 }
   0xe   :  { %2539 = vmatpush3.bf16.msra.mxu1 %v2824_v11 }
   0xf   :  { %2552 = vmatprep.subr.bf16.mxu1 %v2955_v1 }
  0x10   :  { %2563 = vmatpush3.bf16.msra.mxu0 %v2827_v12 }
  0x11   :  { %2541 = vmatmul.mubr.msk.bf16.vlgmr.msra.gmra.mrb[4].mxu1 %vm48_vm1, %v3030_v9  ;;  %2576 = vmatprep.subr.bf16.mxu0 %v2955_v1 }
  0x12   :  { %2553 = vmatpush3.bf16.msra.mxu1 %v2826_v13  ;;  %2556 = vmatprep.mubr.msk.bf16.mxu1 %vm2956_vm0, %v2955_v1 }
  0x13   :  { %2554 = vmatprep.subr.bf16.mxu1 %v2955_v1  ;;  %2565 = vmatmul.mubr.msk.bf16.vlgmr.msra.gmra.mrb[4].mxu0 %vm48_vm1, %v3030_v9 }
  0x14   :  { %2584 = vmatprep.mubr.msk.bf16.mxu0 %vm2956_vm0, %v2955_v1 }
  0x16   :  { %2555 = vmatpush3.bf16.msra.mxu1 %v2828_v14 }
  0x17   :  { %2568 = vmatprep.subr.bf16.mxu1 %v2955_v1 }
  0x19   :  { %2557 = vmatmul.mubr.msk.bf16.vlgmr.msra.gmra.mrb[8].mxu1 %vm48_vm1, %v3017_v5 }
  0x1a   :  { %2572 = vmatprep.mubr.msk.bf16.mxu1 %vm2956_vm0, %v2955_v1 }
  0x1b   :  { %12 = vsyncpa [#allocation3], 0  ;;  %v2829_v15 = vld [vmem:[%s3498_s4 + $0x10] sm:$0xff]   ;;  %v2830_v16 = vld [vmem:[%s3498_s4 + $0x18] sm:$0xff]   ;;  %vm209_vm2 = vcmask 517120   ;;  %vm450_vm3 = vcmask 523264  }
  0x1c   :  { %2569 = vmatpush3.bf16.msra.mxu1 %v2829_v15  ;;  %v2831_v53 = vld [vmem:[%s3499_s5] sm:$0xff]   ;;  %v2832_v54 = vld [vmem:[%s3499_s5 + $0x8] sm:$0xff]   ;;  %v2834_v56 = vld [vmem:[%s3499_s5 + $0x10] sm:$0xff]   ;;  %s2957_s13 = smov [#allocation2]   ;;  %vm2147_vm4 = vcmask 254976  }
  0x1d   :  { %2570 = vmatprep.subr.bf16.mxu1 %v2955_v1  ;;  %v2833_v55 = vld [vmem:[%s3499_s5 + $0x20] sm:$0xff]   ;;  %v2835_v57 = vld [vmem:[%s3499_s5 + $0x28] sm:$0xff]   ;;  %v2836_v58 = vld [vmem:[%s3499_s5 + $0x18] sm:$0xff]   ;;  %s2155_s0 = sshll.u32 %s2957_s13, 4  ;;  %s2156_s0 = int_to_ptr.vmem [resolvable:$true] %s2155_s0 }
  0x1e   :  { %2577 = vmatpush3.bf16.msra.mxu0 %v2833_v55  ;;  %v2837_v59 = vld [vmem:[%s3499_s5 + $0x30] sm:$0xff]   ;;  %v2838_v0 = vld [vmem:[%s3499_s5 + $0x38] sm:$0xff]   ;;  %v2839_v8 = vld [vmem:[%s3497_s3 + $0x20] sm:$0xff]   ;;  %s2931_s14 = scalar_lea.vmem %s2156_s0, 32  ;;  %p2936_p1 = scmp.lt.s32.totalorder %s2156_s0, %s2156_s0 }
  0x1f   :  { %2578 = vmatprep.subr.bf16.mxu0 %v2955_v1  ;;  %v2841_v12 = vld [vmem:[%s3497_s3 + $0x28] sm:$0xff]   ;;  %v2840_v15 = vld [vmem:[%s3496_s2 + $0x20] sm:$0xff]   ;;  %p2932_p0 = scmp.ne.s32.totalorder %s2156_s0, %s2931_s14  ;;  %p2937_p2 = scmp.lt.s32.totalorder %s2931_s14, %s2931_s14 }
  0x20   :  { %2571 = vmatpush3.bf16.msra.mxu1 %v2830_v16 }
  0x21   :  { %2588 = vmatprep.subr.bf16.mxu1 %v2955_v1  ;;  %p2938_p3 = por %p2937_p2, %p2936_p1 }
  0x22   :  { %2579 = vmatpush3.bf16.msra.mxu0 %v2835_v57 }
  0x23   :  { %2573 = vmatmul.mubr.msk.bf16.vlgmr.msra.gmra.mrb[12].mxu1 %vm48_vm1, %v3030_v9  ;;  %2580 = vmatprep.subr.bf16.mxu0 %v2955_v1  ;;  %p2939_p4 = pnand %p2938_p3, %p2932_p0 }
  0x24   :  { %2596 = vmatprep.mubr.msk.bf16.mxu1 %vm2956_vm0, %v2955_v1  ;;  %2589 = vmatpush3.bf16.msra.mxu1 %v2831_v53 }
  0x25   :  { %2590 = vmatprep.subr.bf16.mxu1 %v2955_v1 }
  0x26   :  { %2581 = vmatpush3.bf16.msra.mxu0 %v2837_v59 }
  0x27   :  { %2582 = vmatprep.subr.bf16.mxu0 %v2955_v1 }
  0x28   :  { %2591 = vmatpush3.bf16.msra.mxu1 %v2832_v54 }
  0x29   :  { %2592 = vmatprep.subr.bf16.mxu1 %v2955_v1 }
  0x2a   :  { %2583 = vmatpush3.bf16.msra.mxu0 %v2838_v0 }
  0x2b   :  { %2600 = vmatprep.subr.bf16.mxu0 %v2955_v1 }
  0x2c   :  { %2593 = vmatpush3.bf16.msra.mxu1 %v2834_v56 }
  0x2d   :  { %2594 = vmatprep.subr.bf16.mxu1 %v2955_v1 }
  0x30   :  { %2595 = vmatpush3.bf16.msra.mxu1 %v2836_v58 }
  0x31   :  { %2608 = vmatprep.subr.bf16.mxu1 %v2955_v1 }
  0xdc   :  { %v86_v17 = vpop.f32.mrb[0].mxu1 }
  0xdd   :  { %v2534_v18 = vpop.f32.mrb[1].mxu1 }
  0xde   :  { %v89_v19 = vpop.f32.mrb[2].mxu1  ;;  %v3086_v20 = vpop.f32.mrb[0].mxu0  ;;  %v2843_v18 = vld [vmem:[%s3498_s4 + $0x20] sm:$0xff]  }
  0xdf   :  { %v2535_v21 = vpop.f32.mrb[3].mxu1  ;;  %v2550_v22 = vpop.f32.mrb[1].mxu0  ;;  %v2844_v19 = vld [vmem:[%s3498_s4 + $0x28] sm:$0xff]  }
  0xe0   :  { %v204_v23 = vpop.f32.mrb[2].mxu0  ;;  %v2846_v21 = vld [vmem:[%s3496_s2 + $0x38] sm:$0xff]   ;;  %v2847_v22 = vld [vmem:[%s3497_s3 + $0x30] sm:$0xff]  }
  0xe1   :  { %v2551_v24 = vpop.f32.mrb[3].mxu0  ;;  %v2848_v23 = vld [vmem:[%s3497_s3 + $0x38] sm:$0xff]  }
  0xe4   :  { %v145_v25 = vpop.f32.mrb[4].mxu1 }
  0xe5   :  { %v207_v26 = vmul.f32 %v145_v25, %v86_v17  ;;  %v2542_v27 = vpop.f32.mrb[5].mxu1  ;;  %v2842_v17 = vld [vmem:[%s3496_s2 + $0x28] sm:$0xff]  }
  0xe6   :  { %v148_v28 = vpop.f32.mrb[6].mxu1  ;;  %v339_v29 = vpop.f32.mrb[4].mxu0 }
  0xe7   :  { %v208_v30 = vmul.f32 0.125, %v207_v26  ;;  %v2543_v31 = vpop.f32.mrb[7].mxu1  ;;  %v2566_v32 = vpop.f32.mrb[5].mxu0 }
  0xe8   :  { %v342_v33 = vpop.f32.mrb[6].mxu0 }
  0xe9   :  { %v210_v34 = vsel %vm209_vm2, %v208_v30, -inf  ;;  %v2567_v35 = vpop.f32.mrb[7].mxu0 }
  0xea   :  { %211 = vmax.xlane.f32.xlu0 %v210_v34 }
  0xec   :  { %v282_v36 = vpop.f32.mrb[8].mxu1 }
  0xed   :  { %v402_v37 = vmul.f32 %v339_v29, %v282_v36  ;;  %v2558_v38 = vpop.f32.mrb[9].mxu1 }
  0xee   :  { %v285_v39 = vpop.f32.mrb[10].mxu1 }
  0xef   :  { %v403_v40 = vmul.f32 0.125, %v402_v37  ;;  %v2559_v41 = vpop.f32.mrb[11].mxu1 }
  0xf1   :  { %v404_v42 = vsel %vm209_vm2, %v403_v40, -inf }
  0xf2   :  { %405 = vmax.xlane.f32.xlu0 %v404_v42 }
  0xf6   :  { %v396_v60 = vpop.f32.mrb[12].mxu1 }
  0xf7   :  { %v2574_v61 = vpop.f32.mrb[13].mxu1 }
  0xf8   :  { %v399_v62 = vpop.f32.mrb[14].mxu1 }
  0xf9   :  { %v2575_v63 = vpop.f32.mrb[15].mxu1 }
 0x177   :  { %v212_v43 = vpop.xlane.xlu0 %211 }
 0x178   :  { %v213_v44 = vsub.f32 %v208_v30, %v212_v43 }
 0x17a   :  { %v214_v45 = vmul.f32 1.442695, %v213_v44 }
 0x17c   :  { %2899 = vpow2.f32 %v214_v45 }
 0x17f   :  { %v406_v46 = vpop.xlane.xlu0 %405 }
 0x180   :  { %v407_v47 = vsub.f32 %v403_v40, %v406_v46 }
 0x182   :  { %v408_v48 = vmul.f32 1.442695, %v407_v47 }
 0x184   :  { %2901 = vpow2.f32 %v408_v48 }
 0x186   :  { %v2900_v49 = vpop.eup %2899 }
 0x187   :  { %v216_v50 = vsel %vm209_vm2, %v2900_v49, 0.0 }
 0x188   :  { %217 = vadd.xlane.f32.xlu1 %v216_v50 }
 0x18e   :  { %v2902_v51 = vpop.eup %2901 }
 0x18f   :  { %v410_v52 = vsel %vm209_vm2, %v2902_v51, 0.0 }
 0x190   :  { %411 = vadd.xlane.f32.xlu1 %v410_v52 }
 0x215   :  { %v218_v2 = vpop.xlane.xlu1 %217 }
 0x216   :  { %2903 = vrcp.f32 %v218_v2 }
 0x21d   :  { %v412_v3 = vpop.xlane.xlu1 %411 }
 0x21e   :  { %2905 = vrcp.f32 %v412_v3 }
 0x220   :  { %v2904_v4 = vpop.eup %2903 }
 0x221   :  { %v220_v6 = vmul.f32 %v2904_v4, %v2900_v49  ;;  %v2849_v4 = vld [vmem:[%s3499_s5 + $0x40] sm:$0xff]  }
 0x223   :  { %v221_v7 = vmul.f32 %v220_v6, %v3086_v20  ;;  %v2845_v20 = vld [vmem:[%s3496_s2 + $0x30] sm:$0xff]   ;;  %v2850_v6 = vld [vmem:[%s3499_s5 + $0x48] sm:$0xff]  }
 0x225   :  { %v222_v10 = vpack.c.bf16 %v221_v7, %v221_v7 }
 0x227   :  { %2597 = vmatmul.mubr.msk.bf16.vlgmr.msra.gmra.mrb[16].mxu1 %vm450_vm3, %v222_v10 }
 0x228   :  { %v2906_v11 = vpop.eup %2905  ;;  %2609 = vmatpush3.bf16.msra.mxu1 %v2839_v8  ;;  %2612 = vmatprep.mubr.msk.bf16.mxu1 %vm2956_vm0, %v2955_v1  ;;  %v2851_v8 = vld [vmem:[%s3499_s5 + $0x50] sm:$0xff]  }
 0x229   :  { %v414_v13 = vmul.f32 %v2906_v11, %v2902_v51  ;;  %2610 = vmatprep.subr.bf16.mxu1 %v2955_v1  ;;  %v2852_v11 = vld [vmem:[%s3499_s5 + $0x58] sm:$0xff]  }
 0x22b   :  { %v415_v14 = vmul.f32 %v414_v13, %v396_v60 }
 0x22c   :  { %2611 = vmatpush3.bf16.msra.mxu1 %v2841_v12  ;;  %v2859_v12 = vld [vmem:[%s3499_s5 + $0x60] sm:$0xff]  }
 0x22d   :  { %v416_v16 = vpack.c.bf16 %v415_v14, %v415_v14  ;;  %2624 = vmatprep.subr.bf16.mxu1 %v2955_v1 }
 0x22f   :  { %2585 = vmatmul.mubr.msk.bf16.vlgmr.msra.gmra.mrb[8].mxu0 %vm450_vm3, %v416_v16  ;;  %2613 = vmatmul.mubr.msk.bf16.vlgmr.msra.gmra.mrb[20].mxu1 %vm48_vm1, %v3030_v9 }
 0x230   :  { %2601 = vmatpush3.bf16.msra.mxu0 %v2840_v15  ;;  %2604 = vmatprep.mubr.msk.bf16.mxu0 %vm2956_vm0, %v2955_v1 }
 0x231   :  { %2602 = vmatprep.subr.bf16.mxu0 %v2955_v1  ;;  %2632 = vmatprep.mubr.msk.bf16.mxu1 %vm2956_vm0, %v2955_v1 }
 0x232   :  { %2625 = vmatpush3.bf16.msra.mxu1 %v2849_v4 }
 0x233   :  { %2626 = vmatprep.subr.bf16.mxu1 %v2955_v1 }
 0x234   :  { %2603 = vmatpush3.bf16.msra.mxu0 %v2842_v17  ;;  %v2853_v17 = vld [vmem:[%s3498_s4 + $0x30] sm:$0xff]  }
 0x235   :  { %2616 = vmatprep.subr.bf16.mxu0 %v2955_v1 }
 0x236   :  { %2627 = vmatpush3.bf16.msra.mxu1 %v2850_v6 }
 0x237   :  { %2605 = vmatmul.mubr.msk.bf16.vlgmr.msra.gmra.mrb[12].mxu0 %vm48_vm1, %v3017_v5  ;;  %2628 = vmatprep.subr.bf16.mxu1 %v2955_v1 }
 0x238   :  { %2617 = vmatpush3.bf16.msra.mxu0 %v2843_v18  ;;  %2620 = vmatprep.mubr.msk.bf16.mxu0 %vm2956_vm0, %v2955_v1 }
 0x239   :  { %2618 = vmatprep.subr.bf16.mxu0 %v2955_v1 }
 0x23a   :  { %2629 = vmatpush3.bf16.msra.mxu1 %v2851_v8 }
 0x23b   :  { %2630 = vmatprep.subr.bf16.mxu1 %v2955_v1 }
 0x23c   :  { %2619 = vmatpush3.bf16.msra.mxu0 %v2844_v19  ;;  %v2854_v19 = vld [vmem:[%s3498_s4 + $0x38] sm:$0xff]  }
 0x23d   :  { %2636 = vmatprep.subr.bf16.mxu0 %v2955_v1 }
 0x23e   :  { %2631 = vmatpush3.bf16.msra.mxu1 %v2852_v11 }
 0x23f   :  { %2621 = vmatmul.mubr.msk.bf16.vlgmr.msra.gmra.mrb[16].mxu0 %vm48_vm1, %v3030_v9  ;;  %2652 = vmatprep.subr.bf16.mxu1 %v2955_v1 }
 0x240   :  { %2637 = vmatpush3.bf16.msra.mxu0 %v2845_v20  ;;  %2640 = vmatprep.mubr.msk.bf16.mxu0 %vm2956_vm0, %v2955_v1  ;;  %v2855_v20 = vld [vmem:[%s3496_s2 + $0x40] sm:$0xff]  }
 0x241   :  { %2638 = vmatprep.subr.bf16.mxu0 %v2955_v1 }
 0x244   :  { %2639 = vmatpush3.bf16.msra.mxu0 %v2846_v21  ;;  %v2856_v21 = vld [vmem:[%s3496_s2 + $0x48] sm:$0xff]  }
 0x245   :  { %2644 = vmatprep.subr.bf16.mxu0 %v2955_v1 }
 0x247   :  { %2641 = vmatmul.mubr.msk.bf16.vlgmr.msra.gmra.mrb[20].mxu0 %vm48_vm1, %v3017_v5 }
 0x248   :  { %2645 = vmatpush3.bf16.msra.mxu0 %v2847_v22  ;;  %2648 = vmatprep.mubr.msk.bf16.mxu0 %vm2956_vm0, %v2955_v1  ;;  %v2857_v22 = vld [vmem:[%s3497_s3 + $0x40] sm:$0xff]  }
 0x249   :  { %2646 = vmatprep.subr.bf16.mxu0 %v2955_v1 }
 0x24c   :  { %2647 = vmatpush3.bf16.msra.mxu0 %v2848_v23  ;;  %v2858_v23 = vld [vmem:[%s3497_s3 + $0x48] sm:$0xff]  }
 0x24d   :  { %2660 = vmatprep.subr.bf16.mxu0 %v2955_v1 }
 0x24f   :  { %2649 = vmatmul.mubr.msk.bf16.vlgmr.msra.gmra.mrb[24].mxu0 %vm48_vm1, %v3030_v9 }
 0x250   :  { %2668 = vmatprep.mubr.msk.bf16.mxu0 %vm2956_vm0, %v2955_v1  ;;  %2661 = vmatpush3.bf16.msra.mxu0 %v2859_v12 }
 0x251   :  { %2662 = vmatprep.subr.bf16.mxu0 %v2955_v1 }
 0x2fa   :  { %v555_v24 = vpop.f32.mrb[16].mxu1 }
 0x2fb   :  { %v2598_v25 = vpop.f32.mrb[17].mxu1 }
 0x2fc   :  { %v558_v26 = vpop.f32.mrb[18].mxu1  ;;  %v2861_v25 = vld [vmem:[%s3499_s5 + $0x70] sm:$0xff]  }
 0x2fd   :  { %v2599_v27 = vpop.f32.mrb[19].mxu1  ;;  %v2862_v26 = vld [vmem:[%s3499_s5 + $0x78] sm:$0xff]  }
 0x302   :  { %v488_v28 = vpop.f32.mrb[8].mxu0  ;;  %v669_v29 = vpop.f32.mrb[20].mxu1 }
 0x303   :  { %v3191_v30 = vadd.f32 %v555_v24, %v488_v28  ;;  %v2586_v31 = vpop.f32.mrb[9].mxu0  ;;  %v2614_v32 = vpop.f32.mrb[21].mxu1  ;;  %v2860_v24 = vld [vmem:[%s3499_s5 + $0x68] sm:$0xff]  }
 0x304   :  { %v491_v33 = vpop.f32.mrb[10].mxu0  ;;  %v672_v34 = vpop.f32.mrb[22].mxu1  ;;  %2663 = vmatpush3.bf16.msra.mxu0 %v2860_v24 }
 0x305   :  { %v2587_v35 = vpop.f32.mrb[11].mxu0  ;;  %v2615_v36 = vpop.f32.mrb[23].mxu1  ;;  %2664 = vmatprep.subr.bf16.mxu0 %v2955_v1 }
 0x308   :  { %2665 = vmatpush3.bf16.msra.mxu0 %v2861_v25 }
 0x309   :  { %2666 = vmatprep.subr.bf16.mxu0 %v2955_v1 }
 0x30a   :  { %v612_v37 = vpop.f32.mrb[12].mxu0 }
 0x30b   :  { %v732_v38 = vmul.f32 %v669_v29, %v612_v37  ;;  %v2606_v39 = vpop.f32.mrb[13].mxu0 }
 0x30c   :  { %v615_v40 = vpop.f32.mrb[14].mxu0  ;;  %2667 = vmatpush3.bf16.msra.mxu0 %v2862_v26 }
 0x30d   :  { %v733_v41 = vmul.f32 0.125, %v732_v38  ;;  %v2607_v42 = vpop.f32.mrb[15].mxu0  ;;  %2688 = vmatprep.subr.bf16.mxu0 %v2955_v1  ;;  %v2863_v40 = vld [vmem:[%s3498_s4 + $0x40] sm:$0xff]  }
 0x30f   :  { %v734_v43 = vsel %vm209_vm2, %v733_v41, -inf }
 0x310   :  { %735 = vmax.xlane.f32.xlu0 %v734_v43 }
 0x312   :  { %v726_v44 = vpop.f32.mrb[16].mxu0 }
 0x313   :  { %v2622_v45 = vpop.f32.mrb[17].mxu0 }
 0x314   :  { %v729_v46 = vpop.f32.mrb[18].mxu0 }
 0x315   :  { %v2623_v47 = vpop.f32.mrb[19].mxu0  ;;  %v2865_v46 = vld [vmem:[%s3496_s2 + $0x50] sm:$0xff]  }
 0x31a   :  { %v875_v48 = vpop.f32.mrb[20].mxu0 }
 0x31b   :  { %v2642_v49 = vpop.f32.mrb[21].mxu0 }
 0x31c   :  { %v878_v50 = vpop.f32.mrb[22].mxu0 }
 0x31d   :  { %v2643_v51 = vpop.f32.mrb[23].mxu0 }
 0x322   :  { %v932_v52 = vpop.f32.mrb[24].mxu0 }
 0x323   :  { %v995_v53 = vmul.f32 %v932_v52, %v875_v48  ;;  %v2650_v54 = vpop.f32.mrb[25].mxu0  ;;  %v2866_v48 = vld [vmem:[%s3496_s2 + $0x58] sm:$0xff]  }
 0x324   :  { %v935_v55 = vpop.f32.mrb[26].mxu0 }
 0x325   :  { %v996_v56 = vmul.f32 0.125, %v995_v53  ;;  %v2651_v57 = vpop.f32.mrb[27].mxu0  ;;  %v2867_v53 = vld [vmem:[%s3497_s3 + $0x50] sm:$0xff]  }
 0x326   :  { %v2868_v57 = vld [vmem:[%s3497_s3 + $0x58] sm:$0xff]  }
 0x327   :  { %v997_v58 = vsel %vm209_vm2, %v996_v56, -inf }
 0x328   :  { %998 = vmax.xlane.f32.xlu0 %v997_v58 }
 0x39d   :  { %v736_v59 = vpop.xlane.xlu0 %735 }
 0x39e   :  { %v737_v60 = vsub.f32 %v733_v41, %v736_v59 }
 0x3a0   :  { %v738_v61 = vmul.f32 1.442695, %v737_v60 }
 0x3a2   :  { %2907 = vpow2.f32 %v738_v61 }
 0x3ac   :  { %v2908_v62 = vpop.eup %2907 }
 0x3ad   :  { %v740_v63 = vsel %vm209_vm2, %v2908_v62, 0.0 }
 0x3ae   :  { %741 = vadd.xlane.f32.xlu1 %v740_v63  ;;  %v2869_v63 = vld [vmem:[%s3499_s5 + $0x80] sm:$0xff]  }
 0x3b5   :  { %v999_v0 = vpop.xlane.xlu0 %998 }
 0x3b6   :  { %v1000_v2 = vsub.f32 %v996_v56, %v999_v0  ;;  %v2870_v0 = vld [vmem:[%s3499_s5 + $0x88] sm:$0xff]  }
 0x3b8   :  { %v1001_v3 = vmul.f32 1.442695, %v1000_v2  ;;  %v2871_v2 = vld [vmem:[%s3499_s5 + $0x90] sm:$0xff]  }
 0x3ba   :  { %2909 = vpow2.f32 %v1001_v3  ;;  %v2872_v3 = vld [vmem:[%s3499_s5 + $0x98] sm:$0xff]  }
 0x3c4   :  { %v2910_v7 = vpop.eup %2909 }
 0x3c5   :  { %v1003_v10 = vsel %vm209_vm2, %v2910_v7, 0.0 }
 0x3c6   :  { %1004 = vadd.xlane.f32.xlu1 %v1003_v10 }
 0x43b   :  { %v742_v13 = vpop.xlane.xlu1 %741 }
 0x43c   :  { %2911 = vrcp.f32 %v742_v13 }
 0x446   :  { %v2912_v14 = vpop.eup %2911 }
 0x447   :  { %v744_v15 = vmul.f32 %v2912_v14, %v2908_v62 }
 0x449   :  { %v745_v16 = vmul.f32 %v744_v15, %v726_v44 }
 0x44b   :  { %v746_v18 = vpack.c.bf16 %v745_v16, %v745_v16 }
 0x44d   :  { %2633 = vmatmul.mubr.msk.bf16.vlgmr.msra.gmra.mrb[24].mxu1 %vm450_vm3, %v746_v18 }
 0x44e   :  { %2653 = vmatpush3.bf16.msra.mxu1 %v2853_v17  ;;  %2656 = vmatprep.mubr.msk.bf16.mxu1 %vm2956_vm0, %v2955_v1 }
 0x44f   :  { %2654 = vmatprep.subr.bf16.mxu1 %v2955_v1 }
 0x452   :  { %2655 = vmatpush3.bf16.msra.mxu1 %v2854_v19 }
 0x453   :  { %2672 = vmatprep.subr.bf16.mxu1 %v2955_v1  ;;  %v1005_v27 = vpop.xlane.xlu1 %1004 }
 0x454   :  { %2913 = vrcp.f32 %v1005_v27 }
 0x455   :  { %2657 = vmatmul.mubr.msk.bf16.vlgmr.msra.gmra.mrb[28].mxu1 %vm48_vm1, %v3030_v9 }
 0x456   :  { %2673 = vmatpush3.bf16.msra.mxu1 %v2855_v20  ;;  %2676 = vmatprep.mubr.msk.bf16.mxu1 %vm2956_vm0, %v2955_v1 }
 0x457   :  { %2674 = vmatprep.subr.bf16.mxu1 %v2955_v1 }
 0x45a   :  { %2675 = vmatpush3.bf16.msra.mxu1 %v2856_v21 }
 0x45b   :  { %2680 = vmatprep.subr.bf16.mxu1 %v2955_v1 }
 0x45d   :  { %2677 = vmatmul.mubr.msk.bf16.vlgmr.msra.gmra.mrb[32].mxu1 %vm48_vm1, %v3017_v5 }
 0x45e   :  { %2681 = vmatpush3.bf16.msra.mxu1 %v2857_v22  ;;  %2684 = vmatprep.mubr.msk.bf16.mxu1 %vm2956_vm0, %v2955_v1  ;;  %v2914_v34 = vpop.eup %2913 }
 0x45f   :  { %2682 = vmatprep.subr.bf16.mxu1 %v2955_v1  ;;  %v1007_v35 = vmul.f32 %v2914_v34, %v2910_v7  ;;  %v2875_v34 = vld [vmem:[%s3496_s2 + $0x60] sm:$0xff]  }
 0x462   :  { %2683 = vmatpush3.bf16.msra.mxu1 %v2858_v23 }
 0x463   :  { %2696 = vmatprep.subr.bf16.mxu1 %v2955_v1 }
 0x465   :  { %2685 = vmatmul.mubr.msk.bf16.vlgmr.msra.gmra.mrb[36].mxu1 %vm48_vm1, %v3030_v9 }
 0x466   :  { %2704 = vmatprep.mubr.msk.bf16.mxu1 %vm2956_vm0, %v2955_v1  ;;  %2697 = vmatpush3.bf16.msra.mxu1 %v2869_v63 }
 0x467   :  { %2698 = vmatprep.subr.bf16.mxu1 %v2955_v1 }
 0x46a   :  { %2699 = vmatpush3.bf16.msra.mxu1 %v2870_v0 }
 0x46b   :  { %2700 = vmatprep.subr.bf16.mxu1 %v2955_v1 }
 0x46e   :  { %2701 = vmatpush3.bf16.msra.mxu1 %v2871_v2  ;;  %v2885_v2 = vld [vmem:[%s3496_s2 + $0x70] sm:$0xff]  }
 0x46f   :  { %2702 = vmatprep.subr.bf16.mxu1 %v2955_v1 }
 0x472   :  { %2703 = vmatpush3.bf16.msra.mxu1 %v2872_v3 }
 0x473   :  { %2724 = vmatprep.subr.bf16.mxu1 %v2955_v1 }
 0x520   :  { %v817_v28 = vpop.f32.mrb[24].mxu1 }
 0x521   :  { %v3269_v29 = vadd.f32 %v817_v28, %v3191_v30  ;;  %v2634_v31 = vpop.f32.mrb[25].mxu1  ;;  %v2864_v30 = vld [vmem:[%s3498_s4 + $0x48] sm:$0xff]  }
 0x522   :  { %v820_v32 = vpop.f32.mrb[26].mxu1  ;;  %v2873_v31 = vld [vmem:[%s3498_s4 + $0x50] sm:$0xff]  }
 0x523   :  { %v2635_v33 = vpop.f32.mrb[27].mxu1 }
 0x524   :  { %v2874_v33 = vld [vmem:[%s3498_s4 + $0x58] sm:$0xff]  }
 0x528   :  { %v989_v36 = vpop.f32.mrb[28].mxu1 }
 0x529   :  { %v1008_v37 = vmul.f32 %v1007_v35, %v989_v36  ;;  %v2658_v38 = vpop.f32.mrb[29].mxu1  ;;  %v2876_v35 = vld [vmem:[%s3496_s2 + $0x68] sm:$0xff]   ;;  %v2877_v36 = vld [vmem:[%s3497_s3 + $0x60] sm:$0xff]  }
 0x52a   :  { %v992_v39 = vpop.f32.mrb[30].mxu1 }
 0x52b   :  { %v1009_v41 = vpack.c.bf16 %v1008_v37, %v1008_v37  ;;  %v2659_v42 = vpop.f32.mrb[31].mxu1  ;;  %v2878_v37 = vld [vmem:[%s3497_s3 + $0x68] sm:$0xff]  }
 0x52d   :  { %2669 = vmatmul.mubr.msk.bf16.vlgmr.msra.gmra.mrb[28].mxu0 %vm450_vm3, %v1009_v41 }
 0x52e   :  { %2689 = vmatpush3.bf16.msra.mxu0 %v2863_v40  ;;  %2692 = vmatprep.mubr.msk.bf16.mxu0 %vm2956_vm0, %v2955_v1 }
 0x52f   :  { %2690 = vmatprep.subr.bf16.mxu0 %v2955_v1 }
 0x530   :  { %v1138_v43 = vpop.f32.mrb[32].mxu1 }
 0x531   :  { %v2678_v44 = vpop.f32.mrb[33].mxu1 }
 0x532   :  { %v1141_v45 = vpop.f32.mrb[34].mxu1  ;;  %2691 = vmatpush3.bf16.msra.mxu0 %v2864_v30  ;;  %v2879_v30 = vld [vmem:[%s3499_s5 + $0xa0] sm:$0xff]   ;;  %v2881_v44 = vld [vmem:[%s3499_s5 + $0xb0] sm:$0xff]  }
 0x533   :  { %v2679_v47 = vpop.f32.mrb[35].mxu1  ;;  %2708 = vmatprep.subr.bf16.mxu0 %v2955_v1  ;;  %v2882_v45 = vld [vmem:[%s3499_s5 + $0xb8] sm:$0xff]  }
 0x535   :  { %2693 = vmatmul.mubr.msk.bf16.vlgmr.msra.gmra.mrb[32].mxu0 %vm48_vm1, %v3030_v9 }
 0x536   :  { %2709 = vmatpush3.bf16.msra.mxu0 %v2865_v46  ;;  %2712 = vmatprep.mubr.msk.bf16.mxu0 %vm2956_vm0, %v2955_v1 }
 0x537   :  { %2710 = vmatprep.subr.bf16.mxu0 %v2955_v1 }
 0x538   :  { %v1195_v49 = vpop.f32.mrb[36].mxu1 }
 0x539   :  { %v1258_v50 = vmul.f32 %v1195_v49, %v1138_v43  ;;  %v2686_v51 = vpop.f32.mrb[37].mxu1  ;;  %v2880_v43 = vld [vmem:[%s3499_s5 + $0xa8] sm:$0xff]  }
 0x53a   :  { %v1198_v52 = vpop.f32.mrb[38].mxu1  ;;  %2711 = vmatpush3.bf16.msra.mxu0 %v2866_v48 }
 0x53b   :  { %v1259_v54 = vmul.f32 0.125, %v1258_v50  ;;  %v2687_v55 = vpop.f32.mrb[39].mxu1  ;;  %2716 = vmatprep.subr.bf16.mxu0 %v2955_v1 }
 0x53d   :  { %2713 = vmatmul.mubr.msk.bf16.vlgmr.msra.gmra.mrb[36].mxu0 %vm48_vm1, %v3017_v5  ;;  %v1260_v56 = vsel %vm209_vm2, %v1259_v54, -inf }
 0x53e   :  { %2717 = vmatpush3.bf16.msra.mxu0 %v2867_v53  ;;  %1261 = vmax.xlane.f32.xlu0 %v1260_v56 }
 0x53f   :  { %2718 = vmatprep.subr.bf16.mxu0 %v2955_v1  ;;  %2720 = vmatprep.mubr.msk.bf16.mxu0 %vm2956_vm0, %v2955_v1 }
 0x542   :  { %2719 = vmatpush3.bf16.msra.mxu0 %v2868_v57 }
 0x543   :  { %2732 = vmatprep.subr.bf16.mxu0 %v2955_v1 }
 0x545   :  { %2721 = vmatmul.mubr.msk.bf16.vlgmr.msra.gmra.mrb[40].mxu0 %vm48_vm1, %v3030_v9 }
 0x546   :  { %2740 = vmatprep.mubr.msk.bf16.mxu0 %vm2956_vm0, %v2955_v1  ;;  %2733 = vmatpush3.bf16.msra.mxu0 %v2879_v30 }
 0x547   :  { %2734 = vmatprep.subr.bf16.mxu0 %v2955_v1 }
 0x54a   :  { %2735 = vmatpush3.bf16.msra.mxu0 %v2880_v43 }
 0x54b   :  { %2736 = vmatprep.subr.bf16.mxu0 %v2955_v1 }
 0x54e   :  { %2737 = vmatpush3.bf16.msra.mxu0 %v2881_v44 }
 0x54f   :  { %2738 = vmatprep.subr.bf16.mxu0 %v2955_v1 }
 0x552   :  { %2739 = vmatpush3.bf16.msra.mxu0 %v2882_v45 }
 0x553   :  { %2760 = vmatprep.subr.bf16.mxu0 %v2955_v1 }
 0x5cb   :  { %v1262_v58 = vpop.xlane.xlu0 %1261 }
 0x5cc   :  { %v1263_v59 = vsub.f32 %v1259_v54, %v1262_v58  ;;  %v2883_v58 = vld [vmem:[%s3498_s4 + $0x60] sm:$0xff]  }
 0x5ce   :  { %v1264_v60 = vmul.f32 1.442695, %v1263_v59 }
 0x5d0   :  { %2915 = vpow2.f32 %v1264_v60 }
 0x5da   :  { %v2916_v61 = vpop.eup %2915 }
 0x5db   :  { %v1266_v62 = vsel %vm209_vm2, %v2916_v61, 0.0 }
 0x5dc   :  { %1267 = vadd.xlane.f32.xlu1 %v1266_v62 }
 0x600   :  { %v1080_v4 = vpop.f32.mrb[28].mxu0 }
 0x601   :  { %v3329_v6 = vadd.f32 %v1080_v4, %v3269_v29  ;;  %v2670_v7 = vpop.f32.mrb[29].mxu0  ;;  %v2886_v4 = vld [vmem:[%s3496_s2 + $0x78] sm:$0xff]  }
 0x602   :  { %v1083_v8 = vpop.f32.mrb[30].mxu0 }
 0x603   :  { %v2671_v10 = vpop.f32.mrb[31].mxu0 }
 0x608   :  { %v1252_v11 = vpop.f32.mrb[32].mxu0 }
 0x609   :  { %v2694_v12 = vpop.f32.mrb[33].mxu0 }
 0x60a   :  { %v1255_v13 = vpop.f32.mrb[34].mxu0 }
 0x60b   :  { %v2695_v14 = vpop.f32.mrb[35].mxu0 }
 0x610   :  { %v1401_v15 = vpop.f32.mrb[36].mxu0 }
 0x611   :  { %v2714_v16 = vpop.f32.mrb[37].mxu0 }
 0x612   :  { %v1404_v17 = vpop.f32.mrb[38].mxu0 }
 0x613   :  { %v2715_v18 = vpop.f32.mrb[39].mxu0 }
 0x618   :  { %v1458_v19 = vpop.f32.mrb[40].mxu0 }
 0x619   :  { %v1521_v20 = vmul.f32 %v1458_v19, %v1401_v15  ;;  %v2722_v21 = vpop.f32.mrb[41].mxu0  ;;  %v2888_v15 = vld [vmem:[%s3497_s3 + $0x78] sm:$0xff]  }
 0x61a   :  { %v1461_v22 = vpop.f32.mrb[42].mxu0  ;;  %v2890_v21 = vld [vmem:[%s3499_s5 + $0xc8] sm:$0xff]  }
 0x61b   :  { %v1522_v23 = vmul.f32 0.125, %v1521_v20  ;;  %v2723_v24 = vpop.f32.mrb[43].mxu0  ;;  %v2889_v20 = vld [vmem:[%s3499_s5 + $0xc0] sm:$0xff]   ;;  %v2891_v22 = vld [vmem:[%s3499_s5 + $0xd0] sm:$0xff]  }
 0x61d   :  { %v1523_v25 = vsel %vm209_vm2, %v1522_v23, -inf }
 0x61e   :  { %1524 = vmax.xlane.f32.xlu0 %v1523_v25 }
 0x669   :  { %v1268_v26 = vpop.xlane.xlu1 %1267 }
 0x66a   :  { %2917 = vrcp.f32 %v1268_v26 }
 0x674   :  { %v2918_v27 = vpop.eup %2917 }
 0x675   :  { %v1270_v28 = vmul.f32 %v2918_v27, %v2916_v61  ;;  %v2884_v61 = vld [vmem:[%s3498_s4 + $0x68] sm:$0xff]  }
 0x677   :  { %v1271_v29 = vmul.f32 %v1270_v28, %v1252_v11  ;;  %v2887_v11 = vld [vmem:[%s3497_s3 + $0x70] sm:$0xff]  }
 0x679   :  { %v1272_v32 = vpack.c.bf16 %v1271_v29, %v1271_v29 }
 0x67b   :  { %2705 = vmatmul.mubr.msk.bf16.vlgmr.msra.gmra.mrb[40].mxu1 %vm450_vm3, %v1272_v32 }
 0x67c   :  { %2725 = vmatpush3.bf16.msra.mxu1 %v2873_v31  ;;  %2728 = vmatprep.mubr.msk.bf16.mxu1 %vm2956_vm0, %v2955_v1 }
 0x67d   :  { %2726 = vmatprep.subr.bf16.mxu1 %v2955_v1 }
 0x680   :  { %2727 = vmatpush3.bf16.msra.mxu1 %v2874_v33 }
 0x681   :  { %2744 = vmatprep.subr.bf16.mxu1 %v2955_v1 }
 0x683   :  { %2729 = vmatmul.mubr.msk.bf16.vlgmr.msra.gmra.mrb[44].mxu1 %vm48_vm1, %v3030_v9 }
 0x684   :  { %2745 = vmatpush3.bf16.msra.mxu1 %v2875_v34  ;;  %2748 = vmatprep.mubr.msk.bf16.mxu1 %vm2956_vm0, %v2955_v1 }
 0x685   :  { %2746 = vmatprep.subr.bf16.mxu1 %v2955_v1 }
 0x688   :  { %2747 = vmatpush3.bf16.msra.mxu1 %v2876_v35 }
 0x689   :  { %2752 = vmatprep.subr.bf16.mxu1 %v2955_v1 }
 0x68b   :  { %2749 = vmatmul.mubr.msk.bf16.vlgmr.msra.gmra.mrb[48].mxu1 %vm48_vm1, %v3017_v5 }
 0x68c   :  { %2753 = vmatpush3.bf16.msra.mxu1 %v2877_v36  ;;  %2756 = vmatprep.mubr.msk.bf16.mxu1 %vm2956_vm0, %v2955_v1 }
 0x68d   :  { %2754 = vmatprep.subr.bf16.mxu1 %v2955_v1 }
 0x690   :  { %2755 = vmatpush3.bf16.msra.mxu1 %v2878_v37 }
 0x691   :  { %2768 = vmatprep.subr.bf16.mxu1 %v2955_v1 }
 0x693   :  { %2757 = vmatmul.mubr.msk.bf16.vlgmr.msra.gmra.mrb[52].mxu1 %vm48_vm1, %v3030_v9 }
 0x694   :  { %2776 = vmatprep.mubr.msk.bf16.mxu1 %vm2956_vm0, %v2955_v1  ;;  %2769 = vmatpush3.bf16.msra.mxu1 %v2889_v20 }
 0x695   :  { %2770 = vmatprep.subr.bf16.mxu1 %v2955_v1 }
 0x698   :  { %2771 = vmatpush3.bf16.msra.mxu1 %v2890_v21 }
 0x699   :  { %2772 = vmatprep.subr.bf16.mxu1 %v2955_v1 }
 0x69c   :  { %2773 = vmatpush3.bf16.msra.mxu1 %v2891_v22 }
 0x69d   :  { %2774 = vmatprep.subr.bf16.mxu1 %v2955_v1 }
 0x6ab   :  { %v1525_v38 = vpop.xlane.xlu0 %1524 }
 0x6ac   :  { %v1526_v39 = vsub.f32 %v1522_v23, %v1525_v38  ;;  %v2892_v23 = vld [vmem:[%s3499_s5 + $0xd8] sm:$0xff]  }
 0x6ad   :  { %2775 = vmatpush3.bf16.msra.mxu1 %v2892_v23 }
 0x6ae   :  { %v1527_v40 = vmul.f32 1.442695, %v1526_v39  ;;  %2796 = vmatprep.subr.bf16.mxu1 %v2955_v1 }
 0x6b0   :  { %2919 = vpow2.f32 %v1527_v40 }
 0x6ba   :  { %v2920_v41 = vpop.eup %2919 }
 0x6bb   :  { %v1529_v42 = vsel %vm209_vm2, %v2920_v41, 0.0 }
 0x6bc   :  { %1530 = vadd.xlane.f32.xlu1 %v1529_v42 }
 0x749   :  { %v1531_v46 = vpop.xlane.xlu1 %1530 }
 0x74a   :  { %2921 = vrcp.f32 %v1531_v46 }
 0x74e   :  { %v1343_v47 = vpop.f32.mrb[40].mxu1 }
 0x74f   :  { %v3389_v48 = vadd.f32 %v1343_v47, %v3329_v6  ;;  %v2706_v49 = vpop.f32.mrb[41].mxu1 }
 0x750   :  { %v1346_v50 = vpop.f32.mrb[42].mxu1 }
 0x751   :  { %v2707_v51 = vpop.f32.mrb[43].mxu1  ;;  %v2894_v50 = vld [vmem:[%s3498_s4 + $0x78] sm:$0xff]  }
 0x754   :  { %v2922_v52 = vpop.eup %2921 }
 0x755   :  { %v1533_v53 = vmul.f32 %v2922_v52, %v2920_v41 }
 0x756   :  { %v1515_v54 = vpop.f32.mrb[44].mxu1 }
 0x757   :  { %v1534_v55 = vmul.f32 %v1533_v53, %v1515_v54  ;;  %v2730_v56 = vpop.f32.mrb[45].mxu1 }
 0x758   :  { %v1518_v57 = vpop.f32.mrb[46].mxu1  ;;  %v2895_v56 = vld [vmem:[%s3499_s5 + $0xe0] sm:$0xff]  }
 0x759   :  { %v1535_v59 = vpack.c.bf16 %v1534_v55, %v1534_v55  ;;  %v2731_v60 = vpop.f32.mrb[47].mxu1  ;;  %v2896_v57 = vld [vmem:[%s3499_s5 + $0xe8] sm:$0xff]  }
 0x75b   :  { %2741 = vmatmul.mubr.msk.bf16.vlgmr.msra.gmra.mrb[44].mxu0 %vm450_vm3, %v1535_v59 }
 0x75c   :  { %2761 = vmatpush3.bf16.msra.mxu0 %v2883_v58  ;;  %2764 = vmatprep.mubr.msk.bf16.mxu0 %vm2956_vm0, %v2955_v1  ;;  %v2898_v58 = vld [vmem:[%s3499_s5 + $0xf8] sm:$0xff]  }
 0x75d   :  { %2762 = vmatprep.subr.bf16.mxu0 %v2955_v1 }
 0x75e   :  { %v1664_v62 = vpop.f32.mrb[48].mxu1 }
 0x75f   :  { %v2750_v63 = vpop.f32.mrb[49].mxu1 }
 0x760   :  { %v1667_v0 = vpop.f32.mrb[50].mxu1  ;;  %2763 = vmatpush3.bf16.msra.mxu0 %v2884_v61 }
 0x761   :  { %v2751_v3 = vpop.f32.mrb[51].mxu1  ;;  %2780 = vmatprep.subr.bf16.mxu0 %v2955_v1 }
 0x763   :  { %2765 = vmatmul.mubr.msk.bf16.vlgmr.msra.gmra.mrb[48].mxu0 %vm48_vm1, %v3030_v9 }
 0x764   :  { %2781 = vmatpush3.bf16.msra.mxu0 %v2885_v2  ;;  %2784 = vmatprep.mubr.msk.bf16.mxu0 %vm2956_vm0, %v2955_v1 }
 0x765   :  { %2782 = vmatprep.subr.bf16.mxu0 %v2955_v1 }
 0x766   :  { %v1721_v6 = vpop.f32.mrb[52].mxu1 }
 0x767   :  { %v1784_v7 = vmul.f32 %v1721_v6, %v1664_v62  ;;  %v2758_v8 = vpop.f32.mrb[53].mxu1 }
 0x768   :  { %v1724_v10 = vpop.f32.mrb[54].mxu1  ;;  %2783 = vmatpush3.bf16.msra.mxu0 %v2886_v4 }
 0x769   :  { %v1785_v12 = vmul.f32 0.125, %v1784_v7  ;;  %v2759_v13 = vpop.f32.mrb[55].mxu1  ;;  %2788 = vmatprep.subr.bf16.mxu0 %v2955_v1 }
 0x76b   :  { %2785 = vmatmul.mubr.msk.bf16.vlgmr.msra.gmra.mrb[52].mxu0 %vm48_vm1, %v3017_v5  ;;  %v1786_v14 = vsel %vm209_vm2, %v1785_v12, -inf }
 0x76c   :  { %2789 = vmatpush3.bf16.msra.mxu0 %v2887_v11  ;;  %1787 = vmax.xlane.f32.xlu0 %v1786_v14 }
 0x76d   :  { %2790 = vmatprep.subr.bf16.mxu0 %v2955_v1  ;;  %2792 = vmatprep.mubr.msk.bf16.mxu0 %vm2956_vm0, %v2955_v1 }
 0x770   :  { %2791 = vmatpush3.bf16.msra.mxu0 %v2888_v15 }
 0x771   :  { %2804 = vmatprep.subr.bf16.mxu0 %v2955_v1 }
 0x773   :  { %2793 = vmatmul.mubr.msk.bf16.vlgmr.msra.gmra.mrb[56].mxu0 %vm48_vm1, %v3030_v9 }
 0x774   :  { %2812 = vmatprep.mubr.msk.bf16.mxu0 %vm2956_vm0, %v2955_v1  ;;  %2805 = vmatpush3.bf16.msra.mxu0 %v2895_v56 }
 0x775   :  { %2806 = vmatprep.subr.bf16.mxu0 %v2955_v1 }
 0x778   :  { %2807 = vmatpush3.bf16.msra.mxu0 %v2896_v57 }
 0x779   :  { %2808 = vmatprep.subr.bf16.mxu0 %v2955_v1 }
 0x7f9   :  { %v1788_v5 = vpop.xlane.xlu0 %1787 }
 0x7fa   :  { %v1789_v16 = vsub.f32 %v1785_v12, %v1788_v5  ;;  %v2415_v12 = vld [vmem:[%s3500_s6] ss:$0 sm:$0xff] }
 0x7fc   :  { %v1790_v17 = vmul.f32 1.442695, %v1789_v16 }
 0x7fe   :  { %2923 = vpow2.f32 %v1790_v17 }
 0x808   :  { %v2924_v18 = vpop.eup %2923 }
 0x809   :  { %v1792_v19 = vsel %vm209_vm2, %v2924_v18, 0.0 }
 0x80a   :  { %1793 = vadd.xlane.f32.xlu1 %v1792_v19 }
 0x82e   :  { %v1606_v24 = vpop.f32.mrb[44].mxu0 }
 0x82f   :  { %v1612_v25 = vadd.f32 %v1606_v24, %v3389_v48  ;;  %v2742_v26 = vpop.f32.mrb[45].mxu0  ;;  %v2893_v48 = vld [vmem:[%s3498_s4 + $0x70] sm:$0xff]  }
 0x830   :  { %v1609_v27 = vpop.f32.mrb[46].mxu0 }
 0x831   :  { %v2743_v28 = vpop.f32.mrb[47].mxu0 }
 0x836   :  { %v1778_v29 = vpop.f32.mrb[48].mxu0 }
 0x837   :  { %v2766_v31 = vpop.f32.mrb[49].mxu0 }
 0x838   :  { %v1781_v32 = vpop.f32.mrb[50].mxu0 }
 0x839   :  { %v2767_v33 = vpop.f32.mrb[51].mxu0 }
 0x83e   :  { %v1927_v34 = vpop.f32.mrb[52].mxu0 }
 0x83f   :  { %v2786_v35 = vpop.f32.mrb[53].mxu0 }
 0x840   :  { %v1930_v36 = vpop.f32.mrb[54].mxu0 }
 0x841   :  { %v2787_v37 = vpop.f32.mrb[55].mxu0 }
 0x846   :  { %v1984_v38 = vpop.f32.mrb[56].mxu0 }
 0x847   :  { %v2047_v39 = vmul.f32 %v1984_v38, %v1927_v34  ;;  %v2794_v40 = vpop.f32.mrb[57].mxu0 }
 0x848   :  { %v1987_v41 = vpop.f32.mrb[58].mxu0 }
 0x849   :  { %v2048_v42 = vmul.f32 0.125, %v2047_v39  ;;  %v2795_v30 = vpop.f32.mrb[59].mxu0 }
 0x84b   :  { %v2049_v43 = vsel %vm209_vm2, %v2048_v42, -inf }
 0x84c   :  { %2050 = vmax.xlane.f32.xlu0 %v2049_v43 }
 0x897   :  { %v1794_v44 = vpop.xlane.xlu1 %1793 }
 0x898   :  { %2925 = vrcp.f32 %v1794_v44 }
 0x8a2   :  { %v2926_v45 = vpop.eup %2925 }
 0x8a3   :  { %v1796_v46 = vmul.f32 %v2926_v45, %v2924_v18 }
 0x8a5   :  { %v1797_v47 = vmul.f32 %v1796_v46, %v1778_v29 }
 0x8a7   :  { %v1798_v49 = vpack.c.bf16 %v1797_v47, %v1797_v47 }
 0x8a9   :  { %2777 = vmatmul.mubr.msk.bf16.vlgmr.msra.gmra.mrb[56].mxu1 %vm450_vm3, %v1798_v49 }
 0x8aa   :  { %2797 = vmatpush3.bf16.msra.mxu1 %v2893_v48  ;;  %2800 = vmatprep.mubr.msk.bf16.mxu1 %vm2956_vm0, %v2955_v1 }
 0x8ab   :  { %2798 = vmatprep.subr.bf16.mxu1 %v2955_v1 }
 0x8ae   :  { %2799 = vmatpush3.bf16.msra.mxu1 %v2894_v50 }
 0x8b1   :  { %2801 = vmatmul.mubr.msk.bf16.vlgmr.msra.gmra.mrb[60].mxu1 %vm48_vm1, %v3030_v9  ;;  %v2897_v9 = vld [vmem:[%s3499_s5 + $0xf0] sm:$0xff]  }
 0x8b2   :  { %2809 = vmatpush3.bf16.msra.mxu0 %v2897_v9 }
 0x8b3   :  { %2810 = vmatprep.subr.bf16.mxu0 %v2955_v1 }
 0x8b6   :  { %2811 = vmatpush3.bf16.msra.mxu0 %v2898_v58 }
 0x8d9   :  { %v2051_v51 = vpop.xlane.xlu0 %2050 }
 0x8da   :  { %v2052_v52 = vsub.f32 %v2048_v42, %v2051_v51 }
 0x8dc   :  { %v2053_v53 = vmul.f32 1.442695, %v2052_v52 }
 0x8de   :  { %2927 = vpow2.f32 %v2053_v53 }
 0x8e8   :  { %v2928_v54 = vpop.eup %2927 }
 0x8e9   :  { %v2055_v55 = vsel %vm209_vm2, %v2928_v54, 0.0 }
 0x8ea   :  { %2056 = vadd.xlane.f32.xlu1 %v2055_v55 }
 0x977   :  { %v2057_v59 = vpop.xlane.xlu1 %2056 }
 0x978   :  { %2929 = vrcp.f32 %v2057_v59 }
 0x97c   :  { %v1869_v60 = vpop.f32.mrb[56].mxu1 }
 0x97d   :  { %v1875_v61 = vadd.f32 %v1869_v60, %v1612_v25  ;;  %v2778_v62 = vpop.f32.mrb[57].mxu1 }
 0x97e   :  { %v1872_v63 = vpop.f32.mrb[58].mxu1 }
 0x97f   :  { %v2779_v0 = vpop.f32.mrb[59].mxu1 }
 0x982   :  { %v2930_v2 = vpop.eup %2929 }
 0x983   :  { %v2059_v3 = vmul.f32 %v2930_v2, %v2928_v54 }
 0x984   :  { %v2041_v4 = vpop.f32.mrb[60].mxu1 }
 0x985   :  { %v2060_v6 = vmul.f32 %v2059_v3, %v2041_v4  ;;  %v2802_v7 = vpop.f32.mrb[61].mxu1 }
 0x986   :  { %v2044_v8 = vpop.f32.mrb[62].mxu1 }
 0x987   :  { %v2061_v10 = vpack.c.bf16 %v2060_v6, %v2060_v6  ;;  %v2803_v1 = vpop.f32.mrb[63].mxu1 }
 0x989   :  { %2813 = vmatmul.mubr.msk.bf16.vlgmr.msra.gmra.mrb[60].mxu0 %vm450_vm3, %v2061_v10 }
 0xa5c   :  { %v2132_v11 = vpop.f32.mrb[60].mxu0 }
 0xa5d   :  { %v2138_v13 = vadd.f32 %v2132_v11, %v1875_v61  ;;  %v2814_v14 = vpop.f32.mrb[61].mxu0 }
 0xa5e   :  { %v2135_v15 = vpop.f32.mrb[62].mxu0 }
 0xa5f   :  { %v2146_v5 = vadd.f32 %v2415_v12, %v2138_v13  ;;  %v2815_v16 = vpop.f32.mrb[63].mxu0 }
 0xa61   :  { %2148 = vst.msk [vmem:[#allocation2] sm:$0x3] %vm2147_vm4, %v2146_v5 }
 0xa62   :  { %2942 = shalt.err (!%p2939_p4)
}
 0xa63   :  { %s2943_s6 = scalar_lea.hbm %s3501_s7, 32 }
 0xa64   :  { %p2944_p5 = scmp.ne.s32.totalorder %s3501_s7, %s2943_s6  ;;  %p2947_p6 = scmp.lt.u32.totalorder %s2943_s6, %s3501_s7 }
 0xa66   :  { %p2949_p7 = pnand %p2947_p6, %p2944_p5 }
 0xa68   :  { %2952 = shalt.err (!%p2949_p7)
}
 0xa69   :  { %2158 = dma.vmem_to_hbm [thread:$0]  %s2156_s0, 32, %s3501_s7, [#allocation3]  }
 0xa6a   :  { %2953 = dma.done.wait [#allocation3], 32  }
 0xa6b   :  { %2954 = vsyncadd [#allocation3], 4294967264 }
 0xa6c   :  { %2162 = vsyncpa [#allocation3], 1 }

</bundles_post_ra>
